<compile_context>
chip_gen: v7x
topology: tpu7x:2x2x1
jax: 0.10.0
libtpu: 0.0.40
codegen_flags: <defaults>
</compile_context>

<pallas_src>
import functools

import jax
import jax.numpy as jnp
from jax import lax
from jax.experimental import pallas as pl
from jax.experimental.pallas import tpu as pltpu


def cross_attn_kernel(tgt_ref, qpos_ref, mem_ref, pos_ref,
                      wq_ref, wk_ref, wv_ref, bq_ref, bk_ref, bv_ref,
                      wo_ref, bo_ref, g_ref, beta_ref,
                      o_ref, *, nhead, eps):
    # tgt_ref/qpos_ref: (1, L, D); mem_ref/pos_ref: (1, S, D); weights (D, D);
    # bias / LN params (1, D); o_ref: (1, L, D).
    L = tgt_ref.shape[1]
    D = tgt_ref.shape[2]
    hd = D // nhead
    scale = 1.0 / float(hd) ** 0.5

    x = tgt_ref[0]                       # (L, D) residual input (native dtype)
    q_in = x + qpos_ref[0]               # query = tgt + query_pos
    k_in = mem_ref[0] + pos_ref[0]       # key   = memory + pos
    v_in = mem_ref[0]                    # value = memory

    # QKV projections — weights go to the MXU in their stored dtype, f32
    # accumulation via preferred_element_type (no full-weight astype per step).
    q = jnp.dot(q_in, wq_ref[...], preferred_element_type=jnp.float32) + bq_ref[...]
    k = jnp.dot(k_in, wk_ref[...], preferred_element_type=jnp.float32) + bk_ref[...]
    v = jnp.dot(v_in, wv_ref[...], preferred_element_type=jnp.float32) + bv_ref[...]

    # Per-head scaled-dot-product attention, softmax over the memory axis.
    # TODO(synk): memory_mask / memory_key_padding_mask not implemented
    #             (they are None in this configuration).
    ctx = []
    for h in range(nhead):               # static unroll, nhead is small
        lo = h * hd
        qh = q[:, lo:lo + hd]            # (L, hd)
        kh = k[:, lo:lo + hd]            # (S, hd)
        vh = v[:, lo:lo + hd]            # (S, hd)
        logits = lax.dot_general(        # q @ k^T (contract head dims)
            qh, kh, (((1,), (1,)), ((), ())),
            preferred_element_type=jnp.float32) * scale          # (L, S)
        m = jnp.max(logits, axis=-1, keepdims=True)              # XLU
        p = jnp.exp(logits - m)                                  # EUP
        attn = p / jnp.sum(p, axis=-1, keepdims=True)
        ctx.append(jnp.dot(attn, vh, preferred_element_type=jnp.float32))
    attn_out = jnp.concatenate(ctx, axis=-1)                     # (L, D)

    # Output projection + residual (dropout identity) + LayerNorm (f32 stats).
    y = jnp.dot(attn_out, wo_ref[...], preferred_element_type=jnp.float32) + bo_ref[...]
    r = x.astype(jnp.float32) + y
    mean = jnp.mean(r, axis=-1, keepdims=True)
    var = jnp.mean((r - mean) ** 2, axis=-1, keepdims=True)
    normed = (r - mean) * lax.rsqrt(var + eps)
    out = normed * g_ref[...] + beta_ref[...]
    o_ref[0] = out.astype(o_ref.dtype)


def _resident_spec(shape):
    """BlockSpec for a constant-index (resident) parameter block.

    Single-buffer it (double-buffering a block that never changes is pure VMEM
    waste — matters for realistic D on v7x's 64 MiB VMEM).  Falls back to a
    plain BlockSpec if this Pallas build has no pipeline_mode/Buffered.
    """
    index_map = lambda b: (0,) * len(shape)
    try:
        return pl.BlockSpec(shape, index_map, pipeline_mode=pl.Buffered(1))
    except Exception:
        return pl.BlockSpec(shape, index_map)


def cross_attention_layer_pallas(tgt, memory, params, *, nhead,
                                 query_pos=None, pos=None, eps=1e-5):
    """forward_post of CrossAttentionLayer (normalize_before=False, dropout=0).

    tgt:    (L, B, D)   memory: (S, B, D)
    params: wq/wk/wv/wo (D, D) in x@W layout (torch weight.T),
            bq/bk/bv/bo (D,), gamma/beta (D,).
    Returns (L, B, D).
    """
    L, B, D = tgt.shape
    S = memory.shape[0]
    assert memory.shape[1] == B and memory.shape[2] == D
    assert D % nhead == 0

    if query_pos is None:
        query_pos = jnp.zeros_like(tgt)
    if pos is None:
        pos = jnp.zeros_like(memory)

    # Batch-major: each grid step gets one batch's contiguous (seq, D) slab,
    # lane-dense on D.  Block last-two dims equal the array dims, so no row
    # padding / concatenate / output slicing is needed anywhere.
    tgt_b = jnp.transpose(tgt, (1, 0, 2))          # (B, L, D)
    qpos_b = jnp.transpose(query_pos, (1, 0, 2))
    mem_b = jnp.transpose(memory, (1, 0, 2))       # (B, S, D)
    pos_b = jnp.transpose(pos, (1, 0, 2))

    to2d = lambda p: p.reshape(1, D)
    bq2 = to2d(params["bq"])
    bk2 = to2d(params["bk"])
    bv2 = to2d(params["bv"])
    bo2 = to2d(params["bo"])
    g2 = to2d(params["gamma"])
    beta2 = to2d(params["beta"])

    seq_spec = lambda n: pl.BlockSpec((1, n, D), lambda b: (b, 0, 0))
    w_spec = _resident_spec((D, D))
    vec_spec = pl.BlockSpec((1, D), lambda b: (0, 0))

    out = pl.pallas_call(
        functools.partial(cross_attn_kernel, nhead=nhead, eps=eps),
        out_shape=jax.ShapeDtypeStruct((B, L, D), tgt.dtype),
        grid_spec=pltpu.PrefetchScalarGridSpec(
            num_scalar_prefetch=0,
            grid=(B,),                               # >= 2 steps: megacore shards
            in_specs=[
                seq_spec(L), seq_spec(L),            # tgt, query_pos
                seq_spec(S), seq_spec(S),            # memory, pos
                w_spec, w_spec, w_spec,              # wq, wk, wv (resident)
                vec_spec, vec_spec, vec_spec,        # bq, bk, bv
                w_spec, vec_spec,                    # wo (resident), bo
                vec_spec, vec_spec,                  # LN gamma, beta
            ],
            out_specs=pl.BlockSpec((1, L, D), lambda b: (b, 0, 0)),
        ),
        compiler_params=pltpu.CompilerParams(
            dimension_semantics=("parallel",),
            vmem_limit_bytes=64 * 1024 * 1024,       # fits v5e/v6e/v7x VMEM
        ),
    )(tgt_b, qpos_b, mem_b, pos_b,
      params["wq"], params["wk"], params["wv"], bq2, bk2, bv2,
      params["wo"], bo2, g2, beta2)

    return jnp.transpose(out, (1, 0, 2))             # back to (L, B, D)


def _xavier_uniform(key, shape, dtype=jnp.float32):
    fan_in, fan_out = shape[0], shape[1]
    limit = (6.0 / (fan_in + fan_out)) ** 0.5
    return jax.random.uniform(key, shape, dtype, minval=-limit, maxval=limit)


def _reference(tgt, memory, query_pos, pos, params, nhead, eps=1e-5):
    L, B, D = tgt.shape
    S = memory.shape[0]
    hd = D // nhead
    q = (tgt + query_pos) @ params["wq"] + params["bq"]
    k = (memory + pos) @ params["wk"] + params["bk"]
    v = memory @ params["wv"] + params["bv"]
    q = q.reshape(L, B, nhead, hd).transpose(1, 2, 0, 3)   # (B, H, L, hd)
    k = k.reshape(S, B, nhead, hd).transpose(1, 2, 0, 3)   # (B, H, S, hd)
    v = v.reshape(S, B, nhead, hd).transpose(1, 2, 0, 3)   # (B, H, S, hd)
    logits = jnp.einsum("bhld,bhsd->bhls", q, k) / jnp.sqrt(jnp.float32(hd))
    attn = jax.nn.softmax(logits, axis=-1)
    ctx = jnp.einsum("bhls,bhsd->bhld", attn, v)
    ctx = ctx.transpose(2, 0, 1, 3).reshape(L, B, D)
    y = ctx @ params["wo"] + params["bo"]
    r = tgt + y
    mean = jnp.mean(r, axis=-1, keepdims=True)
    var = jnp.mean((r - mean) ** 2, axis=-1, keepdims=True)
    return (r - mean) * lax.rsqrt(var + eps) * params["gamma"] + params["beta"]


if __name__ == "__main__":
    # Small shapes: target seq L=8, memory seq S=16, batch B=2, d_model D=32,
    # nhead=4 (head_dim=8).
    L, S, B, D, H = 8, 16, 2, 32, 4

    key = jax.random.PRNGKey(0)
    ks = jax.random.split(key, 12)

    tgt = jax.random.normal(ks[0], (L, B, D), jnp.float32)
    memory = jax.random.normal(ks[1], (S, B, D), jnp.float32)
    query_pos = 0.1 * jax.random.normal(ks[2], (L, B, D), jnp.float32)
    pos = 0.1 * jax.random.normal(ks[3], (S, B, D), jnp.float32)

    # Mirrors _reset_parameters: xavier_uniform on >1-D params; small biases;
    # LayerNorm gamma=1, beta=0.
    params = dict(
        wq=_xavier_uniform(ks[4], (D, D)),
        wk=_xavier_uniform(ks[5], (D, D)),
        wv=_xavier_uniform(ks[6], (D, D)),
        wo=_xavier_uniform(ks[7], (D, D)),
        bq=0.1 * jax.random.normal(ks[8], (D,), jnp.float32),
        bk=0.1 * jax.random.normal(ks[9], (D,), jnp.float32),
        bv=0.1 * jax.random.normal(ks[10], (D,), jnp.float32),
        bo=0.1 * jax.random.normal(ks[11], (D,), jnp.float32),
        gamma=jnp.ones((D,), jnp.float32),
        beta=jnp.zeros((D,), jnp.float32),
    )

    out = cross_attention_layer_pallas(tgt, memory, params, nhead=H,
                                       query_pos=query_pos, pos=pos)
    out = jax.block_until_ready(out)

    ref = _reference(tgt, memory, query_pos, pos, params, H)
    assert out.shape == (L, B, D)
    err = float(jnp.max(jnp.abs(out - ref)))
    assert err < 1e-4, f"mismatch vs reference: max abs err {err}"

    print("KERNEL_OK")
</pallas_src>

<mosaic_0001>
module attributes {stable_mosaic.version = 11 : i64} {
  func.func @cross_attn_kernel(%arg0: i32, %arg1: memref<1x8x32xf32, #tpu.memory_space<vmem>>, %arg2: memref<1x8x32xf32, #tpu.memory_space<vmem>>, %arg3: memref<1x16x32xf32, #tpu.memory_space<vmem>>, %arg4: memref<1x16x32xf32, #tpu.memory_space<vmem>>, %arg5: memref<32x32xf32, #tpu.memory_space<vmem>>, %arg6: memref<32x32xf32, #tpu.memory_space<vmem>>, %arg7: memref<32x32xf32, #tpu.memory_space<vmem>>, %arg8: memref<1x32xf32, #tpu.memory_space<vmem>>, %arg9: memref<1x32xf32, #tpu.memory_space<vmem>>, %arg10: memref<1x32xf32, #tpu.memory_space<vmem>>, %arg11: memref<32x32xf32, #tpu.memory_space<vmem>>, %arg12: memref<1x32xf32, #tpu.memory_space<vmem>>, %arg13: memref<1x32xf32, #tpu.memory_space<vmem>>, %arg14: memref<1x32xf32, #tpu.memory_space<vmem>>, %arg15: memref<1x8x32xf32, #tpu.memory_space<vmem>>) attributes {dimension_semantics = [#tpu.dimension_semantics<parallel>], iteration_bounds = array<i64: 2>, scalar_prefetch = 0 : i64, scratch_operands = 0 : i64, tpu.core_type = #tpu.core_type<tc>, window_params = [{transform_indices = @transform_0, window_bounds = array<i64: 1, 8, 32>}, {transform_indices = @transform_1, window_bounds = array<i64: 1, 8, 32>}, {transform_indices = @transform_2, window_bounds = array<i64: 1, 16, 32>}, {transform_indices = @transform_3, window_bounds = array<i64: 1, 16, 32>}, {pipeline_mode = #tpu.pipeline_mode<synchronous>, transform_indices = @transform_4, window_bounds = array<i64: 32, 32>}, {pipeline_mode = #tpu.pipeline_mode<synchronous>, transform_indices = @transform_5, window_bounds = array<i64: 32, 32>}, {pipeline_mode = #tpu.pipeline_mode<synchronous>, transform_indices = @transform_6, window_bounds = array<i64: 32, 32>}, {pipeline_mode = #tpu.pipeline_mode<synchronous>, transform_indices = @transform_7, window_bounds = array<i64: 1, 32>}, {pipeline_mode = #tpu.pipeline_mode<synchronous>, transform_indices = @transform_8, window_bounds = array<i64: 1, 32>}, {pipeline_mode = #tpu.pipeline_mode<synchronous>, transform_indices = @transform_9, window_bounds = array<i64: 1, 32>}, {pipeline_mode = #tpu.pipeline_mode<synchronous>, transform_indices = @transform_10, window_bounds = array<i64: 32, 32>}, {pipeline_mode = #tpu.pipeline_mode<synchronous>, transform_indices = @transform_11, window_bounds = array<i64: 1, 32>}, {pipeline_mode = #tpu.pipeline_mode<synchronous>, transform_indices = @transform_12, window_bounds = array<i64: 1, 32>}, {pipeline_mode = #tpu.pipeline_mode<synchronous>, transform_indices = @transform_13, window_bounds = array<i64: 1, 32>}, {transform_indices = @transform_14, window_bounds = array<i64: 1, 8, 32>}]} {
    %c0 = arith.constant 0 : index
    %c0_0 = arith.constant 0 : index
    %c0_1 = arith.constant 0 : index
    %0 = vector.load %arg1[%c0, %c0_0, %c0_1] : memref<1x8x32xf32, #tpu.memory_space<vmem>>, vector<1x8x32xf32>
    %1 = vector.shape_cast %0 : vector<1x8x32xf32> to vector<8x32xf32>
    %c0_2 = arith.constant 0 : index
    %c0_3 = arith.constant 0 : index
    %c0_4 = arith.constant 0 : index
    %2 = vector.load %arg2[%c0_2, %c0_3, %c0_4] : memref<1x8x32xf32, #tpu.memory_space<vmem>>, vector<1x8x32xf32>
    %3 = vector.shape_cast %2 : vector<1x8x32xf32> to vector<8x32xf32>
    %4 = arith.addf %1, %3 : vector<8x32xf32>
    %c0_5 = arith.constant 0 : index
    %c0_6 = arith.constant 0 : index
    %c0_7 = arith.constant 0 : index
    %5 = vector.load %arg3[%c0_5, %c0_6, %c0_7] : memref<1x16x32xf32, #tpu.memory_space<vmem>>, vector<1x16x32xf32>
    %6 = vector.shape_cast %5 : vector<1x16x32xf32> to vector<16x32xf32>
    %c0_8 = arith.constant 0 : index
    %c0_9 = arith.constant 0 : index
    %c0_10 = arith.constant 0 : index
    %7 = vector.load %arg4[%c0_8, %c0_9, %c0_10] : memref<1x16x32xf32, #tpu.memory_space<vmem>>, vector<1x16x32xf32>
    %8 = vector.shape_cast %7 : vector<1x16x32xf32> to vector<16x32xf32>
    %9 = arith.addf %6, %8 : vector<16x32xf32>
    %c0_11 = arith.constant 0 : index
    %c0_12 = arith.constant 0 : index
    %c0_13 = arith.constant 0 : index
    %10 = vector.load %arg3[%c0_11, %c0_12, %c0_13] : memref<1x16x32xf32, #tpu.memory_space<vmem>>, vector<1x16x32xf32>
    %11 = vector.shape_cast %10 : vector<1x16x32xf32> to vector<16x32xf32>
    %c0_14 = arith.constant 0 : index
    %c0_15 = arith.constant 0 : index
    %12 = vector.load %arg5[%c0_14, %c0_15] : memref<32x32xf32, #tpu.memory_space<vmem>>, vector<32x32xf32>
    %cst = arith.constant dense<0.000000e+00> : vector<8x32xf32>
    %13 = tpu.matmul %4, %12, %cst {dimension_numbers = #tpu.dot_dimension_numbers<[1], [0], [0], [1], [0, 0, 1, 1], [], []>} : vector<8x32xf32>, vector<32x32xf32>, vector<8x32xf32> -> vector<8x32xf32>
    %c0_16 = arith.constant 0 : index
    %c0_17 = arith.constant 0 : index
    %14 = vector.load %arg8[%c0_16, %c0_17] : memref<1x32xf32, #tpu.memory_space<vmem>>, vector<1x32xf32>
    %15 = vector.broadcast %14 : vector<1x32xf32> to vector<8x32xf32>
    %16 = arith.addf %13, %15 : vector<8x32xf32>
    %c0_18 = arith.constant 0 : index
    %c0_19 = arith.constant 0 : index
    %17 = vector.load %arg6[%c0_18, %c0_19] : memref<32x32xf32, #tpu.memory_space<vmem>>, vector<32x32xf32>
    %cst_20 = arith.constant dense<0.000000e+00> : vector<16x32xf32>
    %18 = tpu.matmul %9, %17, %cst_20 {dimension_numbers = #tpu.dot_dimension_numbers<[1], [0], [0], [1], [0, 0, 1, 1], [], []>} : vector<16x32xf32>, vector<32x32xf32>, vector<16x32xf32> -> vector<16x32xf32>
    %c0_21 = arith.constant 0 : index
    %c0_22 = arith.constant 0 : index
    %19 = vector.load %arg9[%c0_21, %c0_22] : memref<1x32xf32, #tpu.memory_space<vmem>>, vector<1x32xf32>
    %20 = vector.broadcast %19 : vector<1x32xf32> to vector<16x32xf32>
    %21 = arith.addf %18, %20 : vector<16x32xf32>
    %c0_23 = arith.constant 0 : index
    %c0_24 = arith.constant 0 : index
    %22 = vector.load %arg7[%c0_23, %c0_24] : memref<32x32xf32, #tpu.memory_space<vmem>>, vector<32x32xf32>
    %cst_25 = arith.constant dense<0.000000e+00> : vector<16x32xf32>
    %23 = tpu.matmul %11, %22, %cst_25 {dimension_numbers = #tpu.dot_dimension_numbers<[1], [0], [0], [1], [0, 0, 1, 1], [], []>} : vector<16x32xf32>, vector<32x32xf32>, vector<16x32xf32> -> vector<16x32xf32>
    %c0_26 = arith.constant 0 : index
    %c0_27 = arith.constant 0 : index
    %24 = vector.load %arg10[%c0_26, %c0_27] : memref<1x32xf32, #tpu.memory_space<vmem>>, vector<1x32xf32>
    %25 = vector.broadcast %24 : vector<1x32xf32> to vector<16x32xf32>
    %26 = arith.addf %23, %25 : vector<16x32xf32>
    %27 = vector.extract_strided_slice %16 {offsets = [0, 0], sizes = [8, 8], strides = [1, 1]} : vector<8x32xf32> to vector<8x8xf32>
    %28 = vector.extract_strided_slice %21 {offsets = [0, 0], sizes = [16, 8], strides = [1, 1]} : vector<16x32xf32> to vector<16x8xf32>
    %29 = vector.extract_strided_slice %26 {offsets = [0, 0], sizes = [16, 8], strides = [1, 1]} : vector<16x32xf32> to vector<16x8xf32>
    %cst_28 = arith.constant dense<0.000000e+00> : vector<8x16xf32>
    %30 = tpu.matmul %27, %28, %cst_28 {dimension_numbers = #tpu.dot_dimension_numbers<[1], [1], [0], [0], [0, 0, 1, 0], [], []>} : vector<8x8xf32>, vector<16x8xf32>, vector<8x16xf32> -> vector<8x16xf32>
    %cst_29 = arith.constant 0.353553385 : f32
    %31 = vector.broadcast %cst_29 : f32 to vector<8x16xf32>
    %32 = arith.mulf %30, %31 : vector<8x16xf32>
    %cst_30 = arith.constant dense<0xFF800000> : vector<8xf32>
    %33 = vector.multi_reduction <maximumf>, %32, %cst_30 [1] : vector<8x16xf32> to vector<8xf32>
    %34 = vector.shape_cast %33 : vector<8xf32> to vector<8x1xf32>
    %35 = vector.broadcast %34 : vector<8x1xf32> to vector<8x16xf32>
    %36 = arith.subf %32, %35 : vector<8x16xf32>
    %37 = math.exp %36 : vector<8x16xf32>
    %cst_31 = arith.constant dense<0.000000e+00> : vector<8xf32>
    %38 = vector.multi_reduction <add>, %37, %cst_31 [1] : vector<8x16xf32> to vector<8xf32>
    %39 = vector.shape_cast %38 : vector<8xf32> to vector<8x1xf32>
    %40 = vector.broadcast %39 : vector<8x1xf32> to vector<8x16xf32>
    %41 = arith.divf %37, %40 : vector<8x16xf32>
    %cst_32 = arith.constant dense<0.000000e+00> : vector<8x8xf32>
    %42 = tpu.matmul %41, %29, %cst_32 {dimension_numbers = #tpu.dot_dimension_numbers<[1], [0], [0], [1], [0, 0, 1, 1], [], []>} : vector<8x16xf32>, vector<16x8xf32>, vector<8x8xf32> -> vector<8x8xf32>
    %43 = vector.extract_strided_slice %16 {offsets = [0, 8], sizes = [8, 8], strides = [1, 1]} : vector<8x32xf32> to vector<8x8xf32>
    %44 = vector.extract_strided_slice %21 {offsets = [0, 8], sizes = [16, 8], strides = [1, 1]} : vector<16x32xf32> to vector<16x8xf32>
    %45 = vector.extract_strided_slice %26 {offsets = [0, 8], sizes = [16, 8], strides = [1, 1]} : vector<16x32xf32> to vector<16x8xf32>
    %cst_33 = arith.constant dense<0.000000e+00> : vector<8x16xf32>
    %46 = tpu.matmul %43, %44, %cst_33 {dimension_numbers = #tpu.dot_dimension_numbers<[1], [1], [0], [0], [0, 0, 1, 0], [], []>} : vector<8x8xf32>, vector<16x8xf32>, vector<8x16xf32> -> vector<8x16xf32>
    %cst_34 = arith.constant 0.353553385 : f32
    %47 = vector.broadcast %cst_34 : f32 to vector<8x16xf32>
    %48 = arith.mulf %46, %47 : vector<8x16xf32>
    %cst_35 = arith.constant dense<0xFF800000> : vector<8xf32>
    %49 = vector.multi_reduction <maximumf>, %48, %cst_35 [1] : vector<8x16xf32> to vector<8xf32>
    %50 = vector.shape_cast %49 : vector<8xf32> to vector<8x1xf32>
    %51 = vector.broadcast %50 : vector<8x1xf32> to vector<8x16xf32>
    %52 = arith.subf %48, %51 : vector<8x16xf32>
    %53 = math.exp %52 : vector<8x16xf32>
    %cst_36 = arith.constant dense<0.000000e+00> : vector<8xf32>
    %54 = vector.multi_reduction <add>, %53, %cst_36 [1] : vector<8x16xf32> to vector<8xf32>
    %55 = vector.shape_cast %54 : vector<8xf32> to vector<8x1xf32>
    %56 = vector.broadcast %55 : vector<8x1xf32> to vector<8x16xf32>
    %57 = arith.divf %53, %56 : vector<8x16xf32>
    %cst_37 = arith.constant dense<0.000000e+00> : vector<8x8xf32>
    %58 = tpu.matmul %57, %45, %cst_37 {dimension_numbers = #tpu.dot_dimension_numbers<[1], [0], [0], [1], [0, 0, 1, 1], [], []>} : vector<8x16xf32>, vector<16x8xf32>, vector<8x8xf32> -> vector<8x8xf32>
    %59 = vector.extract_strided_slice %16 {offsets = [0, 16], sizes = [8, 8], strides = [1, 1]} : vector<8x32xf32> to vector<8x8xf32>
    %60 = vector.extract_strided_slice %21 {offsets = [0, 16], sizes = [16, 8], strides = [1, 1]} : vector<16x32xf32> to vector<16x8xf32>
    %61 = vector.extract_strided_slice %26 {offsets = [0, 16], sizes = [16, 8], strides = [1, 1]} : vector<16x32xf32> to vector<16x8xf32>
    %cst_38 = arith.constant dense<0.000000e+00> : vector<8x16xf32>
    %62 = tpu.matmul %59, %60, %cst_38 {dimension_numbers = #tpu.dot_dimension_numbers<[1], [1], [0], [0], [0, 0, 1, 0], [], []>} : vector<8x8xf32>, vector<16x8xf32>, vector<8x16xf32> -> vector<8x16xf32>
    %cst_39 = arith.constant 0.353553385 : f32
    %63 = vector.broadcast %cst_39 : f32 to vector<8x16xf32>
    %64 = arith.mulf %62, %63 : vector<8x16xf32>
    %cst_40 = arith.constant dense<0xFF800000> : vector<8xf32>
    %65 = vector.multi_reduction <maximumf>, %64, %cst_40 [1] : vector<8x16xf32> to vector<8xf32>
    %66 = vector.shape_cast %65 : vector<8xf32> to vector<8x1xf32>
    %67 = vector.broadcast %66 : vector<8x1xf32> to vector<8x16xf32>
    %68 = arith.subf %64, %67 : vector<8x16xf32>
    %69 = math.exp %68 : vector<8x16xf32>
    %cst_41 = arith.constant dense<0.000000e+00> : vector<8xf32>
    %70 = vector.multi_reduction <add>, %69, %cst_41 [1] : vector<8x16xf32> to vector<8xf32>
    %71 = vector.shape_cast %70 : vector<8xf32> to vector<8x1xf32>
    %72 = vector.broadcast %71 : vector<8x1xf32> to vector<8x16xf32>
    %73 = arith.divf %69, %72 : vector<8x16xf32>
    %cst_42 = arith.constant dense<0.000000e+00> : vector<8x8xf32>
    %74 = tpu.matmul %73, %61, %cst_42 {dimension_numbers = #tpu.dot_dimension_numbers<[1], [0], [0], [1], [0, 0, 1, 1], [], []>} : vector<8x16xf32>, vector<16x8xf32>, vector<8x8xf32> -> vector<8x8xf32>
    %75 = vector.extract_strided_slice %16 {offsets = [0, 24], sizes = [8, 8], strides = [1, 1]} : vector<8x32xf32> to vector<8x8xf32>
    %76 = vector.extract_strided_slice %21 {offsets = [0, 24], sizes = [16, 8], strides = [1, 1]} : vector<16x32xf32> to vector<16x8xf32>
    %77 = vector.extract_strided_slice %26 {offsets = [0, 24], sizes = [16, 8], strides = [1, 1]} : vector<16x32xf32> to vector<16x8xf32>
    %cst_43 = arith.constant dense<0.000000e+00> : vector<8x16xf32>
    %78 = tpu.matmul %75, %76, %cst_43 {dimension_numbers = #tpu.dot_dimension_numbers<[1], [1], [0], [0], [0, 0, 1, 0], [], []>} : vector<8x8xf32>, vector<16x8xf32>, vector<8x16xf32> -> vector<8x16xf32>
    %cst_44 = arith.constant 0.353553385 : f32
    %79 = vector.broadcast %cst_44 : f32 to vector<8x16xf32>
    %80 = arith.mulf %78, %79 : vector<8x16xf32>
    %cst_45 = arith.constant dense<0xFF800000> : vector<8xf32>
    %81 = vector.multi_reduction <maximumf>, %80, %cst_45 [1] : vector<8x16xf32> to vector<8xf32>
    %82 = vector.shape_cast %81 : vector<8xf32> to vector<8x1xf32>
    %83 = vector.broadcast %82 : vector<8x1xf32> to vector<8x16xf32>
    %84 = arith.subf %80, %83 : vector<8x16xf32>
    %85 = math.exp %84 : vector<8x16xf32>
    %cst_46 = arith.constant dense<0.000000e+00> : vector<8xf32>
    %86 = vector.multi_reduction <add>, %85, %cst_46 [1] : vector<8x16xf32> to vector<8xf32>
    %87 = vector.shape_cast %86 : vector<8xf32> to vector<8x1xf32>
    %88 = vector.broadcast %87 : vector<8x1xf32> to vector<8x16xf32>
    %89 = arith.divf %85, %88 : vector<8x16xf32>
    %cst_47 = arith.constant dense<0.000000e+00> : vector<8x8xf32>
    %90 = tpu.matmul %89, %77, %cst_47 {dimension_numbers = #tpu.dot_dimension_numbers<[1], [0], [0], [1], [0, 0, 1, 1], [], []>} : vector<8x16xf32>, vector<16x8xf32>, vector<8x8xf32> -> vector<8x8xf32>
    %91 = tpu.concatenate %42, %58, %74, %90 in 1 : vector<8x8xf32>, vector<8x8xf32>, vector<8x8xf32>, vector<8x8xf32> -> vector<8x32xf32>
    %c0_48 = arith.constant 0 : index
    %c0_49 = arith.constant 0 : index
    %92 = vector.load %arg11[%c0_48, %c0_49] : memref<32x32xf32, #tpu.memory_space<vmem>>, vector<32x32xf32>
    %cst_50 = arith.constant dense<0.000000e+00> : vector<8x32xf32>
    %93 = tpu.matmul %91, %92, %cst_50 {dimension_numbers = #tpu.dot_dimension_numbers<[1], [0], [0], [1], [0, 0, 1, 1], [], []>} : vector<8x32xf32>, vector<32x32xf32>, vector<8x32xf32> -> vector<8x32xf32>
    %c0_51 = arith.constant 0 : index
    %c0_52 = arith.constant 0 : index
    %94 = vector.load %arg12[%c0_51, %c0_52] : memref<1x32xf32, #tpu.memory_space<vmem>>, vector<1x32xf32>
    %95 = vector.broadcast %94 : vector<1x32xf32> to vector<8x32xf32>
    %96 = arith.addf %93, %95 : vector<8x32xf32>
    %97 = arith.addf %1, %96 : vector<8x32xf32>
    %cst_53 = arith.constant dense<0.000000e+00> : vector<8xf32>
    %98 = vector.multi_reduction <add>, %97, %cst_53 [1] : vector<8x32xf32> to vector<8xf32>
    %99 = vector.shape_cast %98 : vector<8xf32> to vector<8x1xf32>
    %cst_54 = arith.constant 3.200000e+01 : f32
    %100 = vector.broadcast %cst_54 : f32 to vector<8x1xf32>
    %101 = arith.divf %99, %100 : vector<8x1xf32>
    %102 = vector.broadcast %101 : vector<8x1xf32> to vector<8x32xf32>
    %103 = arith.subf %97, %102 : vector<8x32xf32>
    %104 = arith.mulf %103, %103 : vector<8x32xf32>
    %cst_55 = arith.constant dense<0.000000e+00> : vector<8xf32>
    %105 = vector.multi_reduction <add>, %104, %cst_55 [1] : vector<8x32xf32> to vector<8xf32>
    %106 = vector.shape_cast %105 : vector<8xf32> to vector<8x1xf32>
    %cst_56 = arith.constant 3.200000e+01 : f32
    %107 = vector.broadcast %cst_56 : f32 to vector<8x1xf32>
    %108 = arith.divf %106, %107 : vector<8x1xf32>
    %109 = vector.broadcast %101 : vector<8x1xf32> to vector<8x32xf32>
    %110 = arith.subf %97, %109 : vector<8x32xf32>
    %cst_57 = arith.constant 9.99999974E-6 : f32
    %111 = vector.broadcast %cst_57 : f32 to vector<8x1xf32>
    %112 = arith.addf %108, %111 : vector<8x1xf32>
    %113 = math.rsqrt %112 : vector<8x1xf32>
    %114 = vector.broadcast %113 : vector<8x1xf32> to vector<8x32xf32>
    %115 = arith.mulf %110, %114 : vector<8x32xf32>
    %c0_58 = arith.constant 0 : index
    %c0_59 = arith.constant 0 : index
    %116 = vector.load %arg13[%c0_58, %c0_59] : memref<1x32xf32, #tpu.memory_space<vmem>>, vector<1x32xf32>
    %117 = vector.broadcast %116 : vector<1x32xf32> to vector<8x32xf32>
    %118 = arith.mulf %115, %117 : vector<8x32xf32>
    %c0_60 = arith.constant 0 : index
    %c0_61 = arith.constant 0 : index
    %119 = vector.load %arg14[%c0_60, %c0_61] : memref<1x32xf32, #tpu.memory_space<vmem>>, vector<1x32xf32>
    %120 = vector.broadcast %119 : vector<1x32xf32> to vector<8x32xf32>
    %121 = arith.addf %118, %120 : vector<8x32xf32>
    %c0_62 = arith.constant 0 : index
    %c0_63 = arith.constant 0 : index
    %c0_64 = arith.constant 0 : index
    %122 = vector.load %arg15[%c0_62, %c0_63, %c0_64] : memref<1x8x32xf32, #tpu.memory_space<vmem>>, vector<1x8x32xf32>
    %123 = vector.shape_cast %122 : vector<1x8x32xf32> to vector<8x32xf32>
    %124 = vector.shape_cast %121 : vector<8x32xf32> to vector<1x8x32xf32>
    tpu.vector_store %arg15[%c0_62, %c0_63, %c0_64], %124 {strides = array<i32>} : memref<1x8x32xf32, #tpu.memory_space<vmem>>, vector<1x8x32xf32>,
    return
  }
  func.func @transform_0(%arg0: i32) -> (i32, i32, i32) {
    %c0_i32 = arith.constant 0 : i32
    %c0_i32_0 = arith.constant 0 : i32
    %c0_i32_1 = arith.constant 0 : i32
    return %arg0, %c0_i32, %c0_i32_0 : i32, i32, i32
  }
  func.func @transform_1(%arg0: i32) -> (i32, i32, i32) {
    %c0_i32 = arith.constant 0 : i32
    %c0_i32_0 = arith.constant 0 : i32
    %c0_i32_1 = arith.constant 0 : i32
    return %arg0, %c0_i32, %c0_i32_0 : i32, i32, i32
  }
  func.func @transform_2(%arg0: i32) -> (i32, i32, i32) {
    %c0_i32 = arith.constant 0 : i32
    %c0_i32_0 = arith.constant 0 : i32
    %c0_i32_1 = arith.constant 0 : i32
    return %arg0, %c0_i32, %c0_i32_0 : i32, i32, i32
  }
  func.func @transform_3(%arg0: i32) -> (i32, i32, i32) {
    %c0_i32 = arith.constant 0 : i32
    %c0_i32_0 = arith.constant 0 : i32
    %c0_i32_1 = arith.constant 0 : i32
    return %arg0, %c0_i32, %c0_i32_0 : i32, i32, i32
  }
  func.func @transform_4(%arg0: i32) -> (i32, i32) {
    %c0_i32 = arith.constant 0 : i32
    %c0_i32_0 = arith.constant 0 : i32
    %c0_i32_1 = arith.constant 0 : i32
    return %c0_i32, %c0_i32_0 : i32, i32
  }
  func.func @transform_5(%arg0: i32) -> (i32, i32) {
    %c0_i32 = arith.constant 0 : i32
    %c0_i32_0 = arith.constant 0 : i32
    %c0_i32_1 = arith.constant 0 : i32
    return %c0_i32, %c0_i32_0 : i32, i32
  }
  func.func @transform_6(%arg0: i32) -> (i32, i32) {
    %c0_i32 = arith.constant 0 : i32
    %c0_i32_0 = arith.constant 0 : i32
    %c0_i32_1 = arith.constant 0 : i32
    return %c0_i32, %c0_i32_0 : i32, i32
  }
  func.func @transform_7(%arg0: i32) -> (i32, i32) {
    %c0_i32 = arith.constant 0 : i32
    %c0_i32_0 = arith.constant 0 : i32
    %c0_i32_1 = arith.constant 0 : i32
    return %c0_i32, %c0_i32_0 : i32, i32
  }
  func.func @transform_8(%arg0: i32) -> (i32, i32) {
    %c0_i32 = arith.constant 0 : i32
    %c0_i32_0 = arith.constant 0 : i32
    %c0_i32_1 = arith.constant 0 : i32
    return %c0_i32, %c0_i32_0 : i32, i32
  }
  func.func @transform_9(%arg0: i32) -> (i32, i32) {
    %c0_i32 = arith.constant 0 : i32
    %c0_i32_0 = arith.constant 0 : i32
    %c0_i32_1 = arith.constant 0 : i32
    return %c0_i32, %c0_i32_0 : i32, i32
  }
  func.func @transform_10(%arg0: i32) -> (i32, i32) {
    %c0_i32 = arith.constant 0 : i32
    %c0_i32_0 = arith.constant 0 : i32
    %c0_i32_1 = arith.constant 0 : i32
    return %c0_i32, %c0_i32_0 : i32, i32
  }
  func.func @transform_11(%arg0: i32) -> (i32, i32) {
    %c0_i32 = arith.constant 0 : i32
    %c0_i32_0 = arith.constant 0 : i32
    %c0_i32_1 = arith.constant 0 : i32
    return %c0_i32, %c0_i32_0 : i32, i32
  }
  func.func @transform_12(%arg0: i32) -> (i32, i32) {
    %c0_i32 = arith.constant 0 : i32
    %c0_i32_0 = arith.constant 0 : i32
    %c0_i32_1 = arith.constant 0 : i32
    return %c0_i32, %c0_i32_0 : i32, i32
  }
  func.func @transform_13(%arg0: i32) -> (i32, i32) {
    %c0_i32 = arith.constant 0 : i32
    %c0_i32_0 = arith.constant 0 : i32
    %c0_i32_1 = arith.constant 0 : i32
    return %c0_i32, %c0_i32_0 : i32, i32
  }
  func.func @transform_14(%arg0: i32) -> (i32, i32, i32) {
    %c0_i32 = arith.constant 0 : i32
    %c0_i32_0 = arith.constant 0 : i32
    %c0_i32_1 = arith.constant 0 : i32
    return %arg0, %c0_i32, %c0_i32_0 : i32, i32, i32
  }
}

</mosaic_0001>

<bundles_post_ra>
// kernel: tpu_custom_call.1
= control target key start
LH: loop header
LB: loop body
LE: loop exit
PB: predicated region body
PF: predicated region fallthrough
CT: control target
= control target key end

     0   :  { %s3835_s0 = inlined_call_operand.hbm [shape: f32[2,8,32], index: 0, kind: input, shape index: {}]   ;;  %s3836_s1 = inlined_call_operand.hbm [shape: f32[2,8,32], index: 1, kind: input, shape index: {}]   ;;  %s3837_s2 = inlined_call_operand.hbm [shape: f32[2,16,32], index: 2, kind: input, shape index: {}]   ;;  %s3838_s3 = inlined_call_operand.hbm [shape: f32[2,16,32], index: 3, kind: input, shape index: {}]   ;;  %s3839_s4 = inlined_call_operand.hbm [shape: f32[32,32], index: 4, kind: input, shape index: {}]   ;;  %s3840_s5 = inlined_call_operand.hbm [shape: f32[32,32], index: 5, kind: input, shape index: {}]   ;;  %s3841_s6 = inlined_call_operand.hbm [shape: f32[32,32], index: 6, kind: input, shape index: {}]   ;;  %s3842_s7 = inlined_call_operand.hbm [shape: f32[1,32], index: 7, kind: input, shape index: {}]   ;;  %s3843_s8 = inlined_call_operand.hbm [shape: f32[1,32], index: 8, kind: input, shape index: {}]   ;;  %s3844_s9 = inlined_call_operand.hbm [shape: f32[1,32], index: 9, kind: input, shape index: {}]   ;;  %s3845_s10 = inlined_call_operand.hbm [shape: f32[32,32], index: 10, kind: input, shape index: {}]   ;;  %s3846_s11 = inlined_call_operand.hbm [shape: f32[1,32], index: 11, kind: input, shape index: {}]   ;;  %s3847_s12 = inlined_call_operand.hbm [shape: f32[1,32], index: 12, kind: input, shape index: {}]   ;;  %s3848_s13 = inlined_call_operand.hbm [shape: f32[1,32], index: 13, kind: input, shape index: {}]   ;;  %s3849_s14 = inlined_call_operand.hbm [shape: f32[2,8,32], index: 14, kind: output, shape index: {}]  }
   0x1   :  { %3880 = sst [smem:[#allocation42_spill]] %s3835_s0 }
   0x2   :  { %3881 = sst [smem:[#allocation43_spill]] %s3836_s1 }
   0x3   :  { %3882 = sst [smem:[#allocation44_spill]] %s3837_s2 }
   0x4   :  { %3883 = sst [smem:[#allocation45_spill]] %s3838_s3 }
   0x5   :  { %3884 = sst [smem:[#allocation46_spill]] %s3839_s4 }
   0x6   :  { %3885 = sst [smem:[#allocation47_spill]] %s3840_s5 }
   0x7   :  { %3886 = sst [smem:[#allocation48_spill]] %s3841_s6 }
   0x8   :  { %3887 = sst [smem:[#allocation49_spill]] %s3842_s7 }
   0x9   :  { %3888 = sst [smem:[#allocation50_spill]] %s3844_s9 }
   0xa   :  { %3889 = sst [smem:[#allocation51_spill]] %s3846_s11 }
   0xb   :  { %3890 = sst [smem:[#allocation52_spill]] %s3848_s13 }
   0xc   :  { %3891 = sst [smem:[#allocation53_spill]] %s3849_s14 }
   0xd   :  { %19 = vsyncpa [#allocation3], 0 }
   0xe   :  { %21 = vsyncpa [#allocation3 + $0x1], 0 }
   0xf   :  { %22 = vsyncpa [#allocation6], 0 }
  0x10   :  { %24 = vsyncpa [#allocation6 + $0x1], 0 }
  0x11   :  { %25 = vsyncpa [#allocation9], 0 }
  0x12   :  { %27 = vsyncpa [#allocation9 + $0x1], 0 }
  0x13   :  { %28 = vsyncpa [#allocation12], 0 }
  0x14   :  { %29 = vsyncpa [#allocation15], 0 }
  0x15   :  { %30 = vsyncpa [#allocation18], 0 }
  0x16   :  { %31 = vsyncpa [#allocation21], 0 }
  0x17   :  { %32 = vsyncpa [#allocation24], 0 }
  0x18   :  { %33 = vsyncpa [#allocation4], 0 }
  0x19   :  { %35 = vsyncpa [#allocation4 + $0x1], 0  ;;  %s3169_s29 = smov 0   ;;  %s3171_s30 = smov 0  }
  0x1a   :  { %s3173_s15 = smov 0   ;;  %s3175_s16 = smov 0  }
  0x1b LB: > { %3892 = sst [smem:[#allocation36_spill]] %s3054_s29  ;;  %s3068_s17 = smov [#allocation10]   ;;  %s3066_s16 = sphi %s3175_s16, %s3953_s16   ;;  %s3062_s15 = sphi %s3173_s15, %s3955_s15   ;;  %s3058_s30 = sphi %s3171_s30, %s3957_s30   ;;  %s3054_s29 = sphi %s3169_s29, %s3956_s29  }
  0x1c   : > { %3893 = sst [smem:[#allocation37_spill]] %s3062_s15  ;;  %s398_s18 = sshll.u32 %s3068_s17, 4  ;;  %s3195_s18 = int_to_ptr.vmem [resolvable:$true] %s398_s18 }
  0x1d   : > { %s3190_s19 = sadd.s32 4294967295, %s3066_s16   ;;  %p2073_p0 = scmp.ge.s32.totalorder %s3066_s16, 1 }
  0x1e   : > { %p3858_p1 = scmp.eq.s32.totalorder %s3190_s19, 0  ;;  %p386_p2 = scmp.lt.s32.totalorder %s3066_s16, 3 }
  0x1f   : > { %s3069_s21 = smov [#allocation11]   ;;  %s3070_s24 = smov [#allocation14]  }
  0x20   : > { %p3197_p3 = pnand %p2073_p0, %p386_p2  ;;  %s411_s22 = sshll.u32 %s3069_s21, 4  ;;  %s3210_s22 = int_to_ptr.vmem [resolvable:$true] %s411_s22 }
  0x21   : > { %s438_s25 = sshll.u32 %s3070_s24, 4  ;;  %s3897_s4 = sld [smem:[#allocation46_spill]]  ;;  %s3212_s25 = int_to_ptr.vmem [resolvable:$true] %s438_s25 }
  0x22   : > { %s3894_s20 = scalar_select %p3197_p3, 1, 0 }
  0x23   : > { %p2397_p5 = pneg %p3197_p3 }
  0x24   : > { %3895 = sst [smem:[#allocation38_spill]] %s3894_s20 }
  0x25   : > { %p3206_p6 = pnand %p2397_p5, %p3858_p1 }
  0x27   : > { %s3896_s23 = scalar_select %p3206_p6, 1, 0 }
  0x28   : > { %s2568_s28 = scalar_lea.hbm %s3897_s4, 512  ;;  %p3222_p8 = pneg %p3206_p6 }
  0x29   : > { %p2569_p7 = scmp.ne.s32.totalorder %s3897_s4, %s2568_s28  ;;  %p2575_p11 = scmp.lt.u32.totalorder %s2568_s28, %s3897_s4 }
  0x2a   : > { %s3898_s21 = scalar_select %p3222_p8, 1, 0 }
  0x2b   : > { %p2571_p9 = pnand %p3222_p8, %p2569_p7 }
  0x2d   : > { %p2572_p10 = pneg %p2571_p9 }
  0x2f   : > { %p2577_p12 = pnand %p2575_p11, %p2572_p10 }
  0x31   : > { %2580 = shalt.err (!%p2577_p12)
}
  0x32   : > { %s2581_s14 = scalar_lea.vmem %s3195_s18, 512  ;;  %p2589_p5 = scmp.lt.s32.totalorder %s3195_s18, %s3195_s18 }
  0x33   : > { %p2582_p13 = scmp.ne.s32.totalorder %s3195_s18, %s2581_s14  ;;  %p2590_p4 = scmp.lt.s32.totalorder %s2581_s14, %s2581_s14 }
  0x35   : > { %p2584_p0 = pnand %p2582_p13, %p3222_p8  ;;  %p2591_p7 = por %p2590_p4, %p2589_p5 }
  0x37   : > { %p2585_p2 = pneg %p2584_p0 }
  0x39   : > { %p2592_p9 = pnand %p2591_p7, %p2585_p2 }
  0x3b   : > { %2595 = shalt.err (!%p2592_p9)
}
  0x3c   : > { %s3856_s26 = smov 128   ;;  %s3860_s20 = smov 8  }
  0x3d   : > { %2400 = dma.hbm_to_vmem [thread:$0]  (!%p3206_p6), %s3897_s4, 512, %s3195_s18, [#allocation9], %s3856_s26, %s3856_s26, %s3860_s20  }
  0x3e   : > { %s3899_s5 = sld [smem:[#allocation47_spill]] }
  0x44   : > { %s2596_s14 = scalar_lea.hbm %s3899_s5, 512 }
  0x45   : > { %p2597_p4 = scmp.ne.s32.totalorder %s3899_s5, %s2596_s14  ;;  %p2603_p12 = scmp.lt.u32.totalorder %s2596_s14, %s3899_s5 }
  0x47   : > { %p2599_p10 = pnand %p2597_p4, %p3222_p8 }
  0x49   : > { %p2600_p11 = pneg %p2599_p10 }
  0x4b   : > { %p2605_p13 = pnand %p2603_p12, %p2600_p11 }
  0x4d   : > { %2608 = shalt.err (!%p2605_p13)
}
  0x4e   : > { %s2609_s18 = scalar_lea.vmem %s3210_s22, 512  ;;  %p2617_p7 = scmp.lt.s32.totalorder %s3210_s22, %s3210_s22 }
  0x4f   : > { %p2610_p0 = scmp.ne.s32.totalorder %s3210_s22, %s2609_s18  ;;  %p2618_p9 = scmp.lt.s32.totalorder %s2609_s18, %s2609_s18 }
  0x51   : > { %p2612_p2 = pnand %p2610_p0, %p3222_p8  ;;  %p2619_p4 = por %p2618_p9, %p2617_p7 }
  0x53   : > { %p2613_p5 = pneg %p2612_p2 }
  0x55   : > { %p2620_p10 = pnand %p2619_p4, %p2613_p5 }
  0x57   : > { %2623 = shalt.err (!%p2620_p10)
}
  0x58   : > { %2403 = dma.hbm_to_vmem [thread:$0]  (!%p3206_p6), %s3899_s5, 512, %s3210_s22, [#allocation12], %s3856_s26, %s3856_s26, %s3860_s20  }
  0x59   : > { %s3900_s7 = sld [smem:[#allocation49_spill]] }
  0x5f   : > { %s2624_s27 = scalar_lea.hbm %s3900_s7, 16 }
  0x60   : > { %p2625_p11 = scmp.ne.s32.totalorder %s3900_s7, %s2624_s27  ;;  %p2631_p0 = scmp.lt.u32.totalorder %s2624_s27, %s3900_s7 }
  0x62   : > { %p2627_p12 = pnand %p2625_p11, %p3222_p8 }
  0x64   : > { %p2628_p13 = pneg %p2627_p12 }
  0x66   : > { %p2633_p2 = pnand %p2631_p0, %p2628_p13 }
  0x68   : > { %2636 = shalt.err (!%p2633_p2)
}
  0x69   : > { %s2637_s22 = scalar_lea.vmem %s3212_s25, 16  ;;  %s2644_s18 = scalar_lea.vmem %s3212_s25, 32 }
  0x6a   : > { %p2638_p5 = scmp.ne.s32.totalorder %s3212_s25, %s2637_s22  ;;  %p2645_p4 = scmp.lt.s32.totalorder %s3212_s25, %s3212_s25 }
  0x6b   : > { %p2646_p10 = scmp.lt.s32.totalorder %s2644_s18, %s2637_s22 }
  0x6c   : > { %p2640_p7 = pnand %p2638_p5, %p3222_p8 }
  0x6d   : > { %p2647_p11 = por %p2646_p10, %p2645_p4 }
  0x6e   : > { %p2641_p9 = pneg %p2640_p7 }
  0x70   : > { %p2648_p12 = pnand %p2647_p11, %p2641_p9 }
  0x72   : > { %2651 = shalt.err (!%p2648_p12)
}
  0x73   : > { %2409 = dma.hbm_to_vmem [thread:$0]  (!%p3206_p6), %s3900_s7, 16, %s3212_s25, [#allocation15]  }
  0x74   : > { %s3073_s3 = smov [#allocation17]   ;;  %s3074_s27 = smov [#allocation20]  }
  0x75   : > { %s460_s13 = sshll.u32 %s3073_s3, 4  ;;  %s484_s28 = sshll.u32 %s3074_s27, 4  ;;  %s461_s13 = int_to_ptr.vmem [resolvable:$true] %s460_s13  ;;  %s485_s28 = int_to_ptr.vmem [resolvable:$true] %s484_s28 }
  0x76   : > { %s3901_s9 = sld [smem:[#allocation50_spill]] }
  0x7c   : > { %s2652_s14 = scalar_lea.hbm %s3901_s9, 16 }
  0x7d   : > { %p2653_p13 = scmp.ne.s32.totalorder %s3901_s9, %s2652_s14  ;;  %p2659_p5 = scmp.lt.u32.totalorder %s2652_s14, %s3901_s9 }
  0x7f   : > { %p2655_p0 = pnand %p2653_p13, %p3222_p8 }
  0x81   : > { %p2656_p2 = pneg %p2655_p0 }
  0x83   : > { %p2661_p7 = pnand %p2659_p5, %p2656_p2 }
  0x85   : > { %2664 = shalt.err (!%p2661_p7)
}
  0x86   : > { %s2665_s25 = scalar_lea.vmem %s461_s13, 16  ;;  %s2672_s2 = scalar_lea.vmem %s461_s13, 32 }
  0x87   : > { %p2666_p9 = scmp.ne.s32.totalorder %s461_s13, %s2665_s25  ;;  %p2673_p11 = scmp.lt.s32.totalorder %s461_s13, %s461_s13 }
  0x88   : > { %p2674_p12 = scmp.lt.s32.totalorder %s2672_s2, %s2665_s25 }
  0x89   : > { %p2668_p4 = pnand %p2666_p9, %p3222_p8 }
  0x8a   : > { %p2675_p1 = por %p2674_p12, %p2673_p11 }
  0x8b   : > { %p2669_p10 = pneg %p2668_p4 }
  0x8d   : > { %p2676_p3 = pnand %p2675_p1, %p2669_p10 }
  0x8f   : > { %2679 = shalt.err (!%p2676_p3)
}
  0x90   : > { %2415 = dma.hbm_to_vmem [thread:$0]  (!%p3206_p6), %s3901_s9, 16, %s461_s13, [#allocation18]  }
  0x91   : > { %s3902_s11 = sld [smem:[#allocation51_spill]] }
  0x97   : > { %s2680_s24 = scalar_lea.hbm %s3902_s11, 16 }
  0x98   : > { %p2681_p13 = scmp.ne.s32.totalorder %s3902_s11, %s2680_s24  ;;  %p2687_p3 = scmp.lt.u32.totalorder %s2680_s24, %s3902_s11 }
  0x9a   : > { %p2683_p0 = pnand %p2681_p13, %p3222_p8 }
  0x9c   : > { %p2684_p1 = pneg %p2683_p0 }
  0x9e   : > { %p2689_p2 = pnand %p2687_p3, %p2684_p1 }
  0xa0   : > { %2692 = shalt.err (!%p2689_p2)
}
  0xa1   : > { %s2693_s25 = scalar_lea.vmem %s485_s28, 16  ;;  %s2700_s13 = scalar_lea.vmem %s485_s28, 32 }
  0xa2   : > { %p2694_p5 = scmp.ne.s32.totalorder %s485_s28, %s2693_s25  ;;  %p2701_p4 = scmp.lt.s32.totalorder %s485_s28, %s485_s28 }
  0xa3   : > { %p2702_p10 = scmp.lt.s32.totalorder %s2700_s13, %s2693_s25 }
  0xa4   : > { %p2696_p7 = pnand %p2694_p5, %p3222_p8 }
  0xa5   : > { %p2703_p11 = por %p2702_p10, %p2701_p4 }
  0xa6   : > { %p2697_p9 = pneg %p2696_p7 }
  0xa8   : > { %p2704_p12 = pnand %p2703_p11, %p2697_p9 }
  0xaa   : > { %2707 = shalt.err (!%p2704_p12)
}
  0xab   : > { %2421 = dma.hbm_to_vmem [thread:$0]  (!%p3206_p6), %s3902_s11, 16, %s485_s28, [#allocation21]  }
  0xac   : > { %s2072_s27 = sadd.s32 4294967294, %s3066_s16   ;;  %s3334_s26 = sadd.s32 1, %s3066_s16  }
  0xad   : > { %3903 = sst [smem:[#allocation39_spill]] %s3334_s26  ;;  %s48_s17 = sadd.s32 1, %s3062_s15 }
  0xae   : > { %s45_s24 = ssub.s32 %s3066_s16, %s3334_s26  ;;  %p55_p13 = scmp.ne.s32.totalorder %s3062_s15, %s3058_s30 }
  0xaf   : > { %p46_p0 = scmp.eq.s32.totalorder %s45_s24, 0  ;;  %p56_p1 = scmp.eq.s32.totalorder %s3066_s16, 0 }
  0xb0   : > { %p61_p3 = scmp.ne.s32.totalorder %s3058_s30, %s3054_s29  ;;  %p373_p2 = scmp.eq.s32.totalorder %s3190_s19, 1 }
  0xb1   : > { %s3346_s14 = scalar_select %p46_p0, %s3062_s15, %s48_s17  }
  0xb2   : > { %p57_p5 = por %p56_p1, %p55_p13  ;;  %p3905_p7 = scmp.eq.s32.totalorder %s3190_s19, 0 }
  0xb3   : > { %3904 = sst [smem:[#allocation40_spill]] %s3346_s14  ;;  %p3354_p4 = por %p373_p2, %p55_p13 }
  0xb4   : > { %p3350_p9 = por %p3905_p7, %p61_p3  ;;  %p379_p10 = scmp.eq.s32.totalorder %s2072_s27, 1 }
  0xb5   : > { %s3907_s22 = scalar_select %p3354_p4, 1, 0 }
  0xb6   : > { %s3906_s28 = scalar_select %p3350_p9, 1, 0 }
  0xb7   : > { %p2455_p11 = scmp.lt.s32.totalorder %s3066_s16, 2  ;;  %s3360_s18 = sand.u32 1, %s3062_s15  }
  0xb8   : > { %p3362_p12 = por %p379_p10, %p61_p3  ;;  %s3862_s25 = sshll.u32 %s3360_s18, 3 }
  0xb9   : > { %s3863_s13 = sshll.u32 %s3066_s16, 7  ;;  %p3368_p0 = pnand %p2455_p11, %p57_p5 }
  0xba   : > { %s3908_s0 = scalar_select %p3362_p12, 1, 0 }
  0xbb   : > { %s3910_s2 = scalar_select %p3368_p0, 1, 0 }
  0xbc   : > { %3909 = sst [smem:[#allocation41_spill]] %s3908_s0  ;;  %s3865_s3 = sand.u32 1, %s3066_s16  }
  0xbd   : > { %s3911_s1 = sld [smem:[#allocation43_spill]]  ;;  %s539_s20 = scalar_lea.vmem [#allocation5], %s3862_s25 }
  0xbe   : > { %s546_s4 = sshll.u32 %s539_s20, 4  ;;  %s3387_s7 = scalar_lea.sflag [#allocation6], %s3865_s3  ;;  %s3382_s4 = int_to_ptr.vmem [resolvable:$true] %s546_s4 }
  0xbf   : > { %p3393_p1 = pneg %p3368_p0 }
  0xc1   : > { %s3912_s27 = scalar_select %p3393_p1, 1, 0 }
  0xc3   : > { %s3378_s24 = scalar_lea.hbm %s3911_s1, %s3863_s13  ;;  %s2713_s20 = scalar_lea.hbm %s3911_s1, 256 }
  0xc4   : > { %s2708_s9 = scalar_lea.hbm %s3378_s24, 128  ;;  %p2714_p5 = scmp.lt.u32.totalorder %s3378_s24, %s3911_s1 }
  0xc5   : > { %p2709_p13 = scmp.ne.s32.totalorder %s3378_s24, %s2708_s9  ;;  %p2715_p7 = scmp.lt.u32.totalorder %s2713_s20, %s2708_s9 }
  0xc6   : > { %p2717_p11 = scmp.lt.u32.totalorder %s2708_s9, %s3378_s24 }
  0xc7   : > { %p2711_p3 = pnand %p3393_p1, %p2709_p13  ;;  %p2716_p10 = por %p2715_p7, %p2714_p5 }
  0xc9   : > { %p2712_p2 = pneg %p2711_p3  ;;  %p2718_p12 = por %p2717_p11, %p2716_p10 }
  0xcb   : > { %p2719_p4 = pnand %p2718_p12, %p2712_p2 }
  0xcd   : > { %2722 = shalt.err (!%p2719_p4)
}
  0xce   : > { %s2723_s3 = scalar_lea.vmem %s3382_s4, 128  ;;  %s3075_s25 = smov [#allocation5]  }
  0xcf   : > { %p2724_p13 = scmp.ne.s32.totalorder %s3382_s4, %s2723_s3  ;;  %s2728_s17 = sshll.u32 %s3075_s25, 4  ;;  %s2729_s17 = int_to_ptr.vmem [resolvable:$false] %s2728_s17 }
  0xd0   : > { %s2730_s5 = scalar_lea.vmem %s2729_s17, 256  ;;  %p2731_p6 = scmp.lt.s32.totalorder %s3382_s4, %s2729_s17 }
  0xd1   : > { %p2726_p3 = pnand %p2724_p13, %p3393_p1  ;;  %p2732_p8 = scmp.lt.s32.totalorder %s2730_s5, %s2723_s3 }
  0xd3   : > { %p2727_p9 = pneg %p2726_p3  ;;  %p2733_p5 = por %p2732_p8, %p2731_p6 }
  0xd5   : > { %p2734_p7 = pnand %p2733_p5, %p2727_p9 }
  0xd7   : > { %2737 = shalt.err (!%p2734_p7)
}
  0xd8   : > { %2434 = dma.hbm_to_vmem [thread:$0]  (!%p3368_p0), %s3378_s24, 128, %s3382_s4, %s3387_s7  }
  0xd9   : > { %s3913_s9 = sshll.u32 %s3360_s18, 4  ;;  %s3076_s5 = smov [#allocation13]  }
  0xda   : > { %s557_s13 = scalar_lea.vmem [#allocation7], %s3913_s9  ;;  %s3914_s25 = smov %s3913_s9 }
  0xdb   : > { %s564_s20 = sshll.u32 %s557_s13, 4  ;;  %s578_s17 = scalar_lea.vmem [#allocation8], %s3914_s25  ;;  %s3419_s20 = int_to_ptr.vmem [resolvable:$true] %s564_s20 }
  0xdc   : > { %s585_s3 = sshll.u32 %s578_s17, 4  ;;  %s424_s1 = sshll.u32 %s3076_s5, 4  ;;  %s3423_s3 = int_to_ptr.vmem [resolvable:$true] %s585_s3  ;;  %s425_s1 = int_to_ptr.vmem [resolvable:$true] %s424_s1 }
  0xdd   : > { %s3077_s11 = smov [#allocation16]   ;;  %s3915_s6 = sld [smem:[#allocation48_spill]] }
  0xde   : > { %s449_s14 = sshll.u32 %s3077_s11, 4  ;;  %p3916_p8 = scmp.ne.s32.totalorder %s3898_s21, 0  ;;  %s450_s14 = int_to_ptr.vmem [resolvable:$true] %s449_s14 }
  0xe3   : > { %s2738_s0 = scalar_lea.hbm %s3915_s6, 512 }
  0xe4   : > { %p2739_p6 = scmp.ne.s32.totalorder %s3915_s6, %s2738_s0  ;;  %p2745_p12 = scmp.lt.u32.totalorder %s2738_s0, %s3915_s6 }
  0xe6   : > { %p2741_p9 = pnand %p2739_p6, %p3916_p8 }
  0xe8   : > { %p2742_p4 = pneg %p2741_p9 }
  0xea   : > { %p2747_p2 = pnand %p2745_p12, %p2742_p4 }
  0xec   : > { %2750 = shalt.err (!%p2747_p2)
}
  0xed   : > { %s2751_s25 = scalar_lea.vmem %s425_s1, 512  ;;  %p2759_p3 = scmp.lt.s32.totalorder %s425_s1, %s425_s1 }
  0xee   : > { %p2752_p10 = scmp.ne.s32.totalorder %s425_s1, %s2751_s25  ;;  %p2760_p5 = scmp.lt.s32.totalorder %s2751_s25, %s2751_s25 }
  0xf0   : > { %p2754_p11 = pnand %p2752_p10, %p3916_p8  ;;  %p2761_p7 = por %p2760_p5, %p2759_p3 }
  0xf2   : > { %p2755_p13 = pneg %p2754_p11 }
  0xf4   : > { %p2762_p0 = pnand %p2761_p7, %p2755_p13 }
  0xf6   : > { %2765 = shalt.err (!%p2762_p0)
}
  0xf7   : > { %p3917_p6 = scmp.ne.s32.totalorder %s3896_s23, 0  ;;  %s3918_s11 = smov 8  }
  0xf8   : > { %s3919_s15 = smov 128   ;;  %s2766_s4 = scalar_lea.hbm %s3843_s8, 16 }
  0xf9   : > { %2406 = dma.hbm_to_vmem [thread:$0]  (!%p3917_p6), %s3915_s6, 512, %s425_s1, [#allocation12], %s3919_s15, %s3919_s15, %s3918_s11  }
  0xfa   : > { %p2767_p9 = scmp.ne.s32.totalorder %s3843_s8, %s2766_s4  ;;  %p2773_p12 = scmp.lt.u32.totalorder %s2766_s4, %s3843_s8 }
  0xfc   : > { %p2769_p0 = pnand %p2767_p9, %p3916_p8 }
  0xfe   : > { %p2770_p4 = pneg %p2769_p0 }
 0x100   : > { %p2775_p2 = pnand %p2773_p12, %p2770_p4 }
 0x102   : > { %2778 = shalt.err (!%p2775_p2)
}
 0x103   : > { %s2779_s26 = scalar_lea.vmem %s450_s14, 16  ;;  %s2786_s1 = scalar_lea.vmem %s450_s14, 32 }
 0x104   : > { %p2780_p10 = scmp.ne.s32.totalorder %s450_s14, %s2779_s26  ;;  %p2787_p3 = scmp.lt.s32.totalorder %s450_s14, %s450_s14 }
 0x105   : > { %p2788_p5 = scmp.lt.s32.totalorder %s2786_s1, %s2779_s26 }
 0x106   : > { %p2782_p11 = pnand %p2780_p10, %p3916_p8 }
 0x107   : > { %p2789_p7 = por %p2788_p5, %p2787_p3 }
 0x108   : > { %p2783_p13 = pneg %p2782_p11 }
 0x10a   : > { %p2790_p1 = pnand %p2789_p7, %p2783_p13 }
 0x10c   : > { %2793 = shalt.err (!%p2790_p1)
}
 0x10d   : > { %2412 = dma.hbm_to_vmem [thread:$0]  (!%p3917_p6), %s3843_s8, 16, %s450_s14, [#allocation15]  }
 0x10e   : > { %s3078_s5 = smov [#allocation19]   ;;  %s3079_s24 = smov [#allocation22]  }
 0x10f   : > { %s470_s4 = sshll.u32 %s3078_s5, 4  ;;  %s495_s9 = sshll.u32 %s3079_s24, 4  ;;  %s471_s4 = int_to_ptr.vmem [resolvable:$true] %s470_s4  ;;  %s496_s9 = int_to_ptr.vmem [resolvable:$true] %s495_s9 }
 0x110   : > { %s2794_s6 = scalar_lea.hbm %s3845_s10, 512 }
 0x111   : > { %p2795_p1 = scmp.ne.s32.totalorder %s3845_s10, %s2794_s6  ;;  %p2801_p4 = scmp.lt.u32.totalorder %s2794_s6, %s3845_s10 }
 0x113   : > { %p2797_p9 = pnand %p2795_p1, %p3916_p8 }
 0x115   : > { %p2798_p0 = pneg %p2797_p9 }
 0x117   : > { %p2803_p12 = pnand %p2801_p4, %p2798_p0 }
 0x119   : > { %2806 = shalt.err (!%p2803_p12)
}
 0x11a   : > { %s2807_s14 = scalar_lea.vmem %s471_s4, 512  ;;  %p2815_p13 = scmp.lt.s32.totalorder %s471_s4, %s471_s4 }
 0x11b   : > { %p2808_p2 = scmp.ne.s32.totalorder %s471_s4, %s2807_s14  ;;  %p2816_p3 = scmp.lt.s32.totalorder %s2807_s14, %s2807_s14 }
 0x11d   : > { %p2810_p10 = pnand %p2808_p2, %p3916_p8  ;;  %p2817_p5 = por %p2816_p3, %p2815_p13 }
 0x11f   : > { %p2811_p11 = pneg %p2810_p10 }
 0x121   : > { %p2818_p7 = pnand %p2817_p5, %p2811_p11 }
 0x123   : > { %2821 = shalt.err (!%p2818_p7)
}
 0x124   : > { %2418 = dma.hbm_to_vmem [thread:$0]  (!%p3917_p6), %s3845_s10, 512, %s471_s4, [#allocation18], %s3919_s15, %s3919_s15, %s3918_s11  }
 0x125   : > { %s2822_s24 = scalar_lea.hbm %s3847_s12, 16 }
 0x126   : > { %p2823_p1 = scmp.ne.s32.totalorder %s3847_s12, %s2822_s24  ;;  %p2829_p4 = scmp.lt.u32.totalorder %s2822_s24, %s3847_s12 }
 0x128   : > { %p2825_p9 = pnand %p2823_p1, %p3916_p8 }
 0x12a   : > { %p2826_p0 = pneg %p2825_p9 }
 0x12c   : > { %p2831_p12 = pnand %p2829_p4, %p2826_p0 }
 0x12e   : > { %2834 = shalt.err (!%p2831_p12)
}
 0x12f   : > { %s2835_s0 = scalar_lea.vmem %s496_s9, 16  ;;  %s2842_s4 = scalar_lea.vmem %s496_s9, 32 }
 0x130   : > { %p2836_p2 = scmp.ne.s32.totalorder %s496_s9, %s2835_s0  ;;  %p2843_p13 = scmp.lt.s32.totalorder %s496_s9, %s496_s9 }
 0x131   : > { %p2844_p3 = scmp.lt.s32.totalorder %s2842_s4, %s2835_s0 }
 0x132   : > { %p2838_p10 = pnand %p2836_p2, %p3916_p8 }
 0x133   : > { %p2845_p5 = por %p2844_p3, %p2843_p13 }
 0x134   : > { %p2839_p11 = pneg %p2838_p10 }
 0x136   : > { %p2846_p7 = pnand %p2845_p5, %p2839_p11 }
 0x138   : > { %2849 = shalt.err (!%p2846_p7)
}
 0x139   : > { %2424 = dma.hbm_to_vmem [thread:$0]  (!%p3917_p6), %s3847_s12, 16, %s496_s9, [#allocation21]  }
 0x13a   : > { %s3080_s6 = smov [#allocation23]   ;;  %s3920_s13 = sld [smem:[#allocation52_spill]] }
 0x13b   : > { %s506_s17 = sshll.u32 %s3080_s6, 4  ;;  %s507_s17 = int_to_ptr.vmem [resolvable:$true] %s506_s17 }
 0x140   : > { %s2850_s25 = scalar_lea.hbm %s3920_s13, 16 }
 0x141   : > { %p2851_p1 = scmp.ne.s32.totalorder %s3920_s13, %s2850_s25  ;;  %p2857_p4 = scmp.lt.u32.totalorder %s2850_s25, %s3920_s13 }
 0x143   : > { %p2853_p9 = pnand %p2851_p1, %p3916_p8 }
 0x145   : > { %p2854_p0 = pneg %p2853_p9 }
 0x147   : > { %p2859_p12 = pnand %p2857_p4, %p2854_p0 }
 0x149   : > { %2862 = shalt.err (!%p2859_p12)
}
 0x14a   : > { %s2863_s9 = scalar_lea.vmem %s507_s17, 16  ;;  %s2870_s14 = scalar_lea.vmem %s507_s17, 32 }
 0x14b   : > { %p2864_p2 = scmp.ne.s32.totalorder %s507_s17, %s2863_s9  ;;  %p2871_p13 = scmp.lt.s32.totalorder %s507_s17, %s507_s17 }
 0x14c   : > { %p2872_p3 = scmp.lt.s32.totalorder %s2870_s14, %s2863_s9 }
 0x14d   : > { %p2866_p10 = pnand %p2864_p2, %p3916_p8 }
 0x14e   : > { %p2873_p5 = por %p2872_p3, %p2871_p13 }
 0x14f   : > { %p2867_p11 = pneg %p2866_p10 }
 0x151   : > { %p2874_p7 = pnand %p2873_p5, %p2867_p11 }
 0x153   : > { %2877 = shalt.err (!%p2874_p7)
}
 0x154   : > { %2427 = dma.hbm_to_vmem [thread:$0]  (!%p3917_p6), %s3920_s13, 16, %s507_s17, [#allocation24]  }
 0x155   : > { %s3921_s21 = sshll.u32 %s3066_s16, 7  ;;  %s3922_s25 = sld [smem:[#allocation42_spill]] }
 0x156   : > { %s3923_s1 = sshll.u32 %s3360_s18, 3  ;;  %s2143_s4 = sshll.u32 %s3066_s16, 8 }
 0x157   : > { %s521_s23 = scalar_lea.vmem [#allocation2], %s3923_s1  ;;  %s518_s9 = scalar_lea.sflag [#allocation3], %s3360_s18 }
 0x158   : > { %s528_s0 = sshll.u32 %s521_s23, 4  ;;  %p3924_p6 = scmp.ne.s32.totalorder %s3912_s27, 0  ;;  %s3530_s0 = int_to_ptr.vmem [resolvable:$true] %s528_s0 }
 0x15b   : > { %s3526_s26 = scalar_lea.hbm %s3922_s25, %s3921_s21  ;;  %s2883_s6 = scalar_lea.hbm %s3922_s25, 256 }
 0x15c   : > { %s2878_s14 = scalar_lea.hbm %s3526_s26, 128  ;;  %p2884_p0 = scmp.lt.u32.totalorder %s3526_s26, %s3922_s25 }
 0x15d   : > { %p2879_p8 = scmp.ne.s32.totalorder %s3526_s26, %s2878_s14  ;;  %p2885_p4 = scmp.lt.u32.totalorder %s2883_s6, %s2878_s14 }
 0x15e   : > { %p2887_p2 = scmp.lt.u32.totalorder %s2878_s14, %s3526_s26 }
 0x15f   : > { %p2881_p1 = pnand %p2879_p8, %p3924_p6  ;;  %p2886_p12 = por %p2885_p4, %p2884_p0 }
 0x161   : > { %p2882_p9 = pneg %p2881_p1  ;;  %p2888_p10 = por %p2887_p2, %p2886_p12 }
 0x163   : > { %p2889_p11 = pnand %p2888_p10, %p2882_p9 }
 0x165   : > { %2892 = shalt.err (!%p2889_p11)
}
 0x166   : > { %s2893_s18 = scalar_lea.vmem %s3530_s0, 128  ;;  %s3081_s24 = smov [#allocation2]  }
 0x167   : > { %p2894_p13 = scmp.ne.s32.totalorder %s3530_s0, %s2893_s18  ;;  %s2898_s1 = sshll.u32 %s3081_s24, 4  ;;  %s2899_s1 = int_to_ptr.vmem [resolvable:$false] %s2898_s1 }
 0x168   : > { %s2900_s23 = scalar_lea.vmem %s2899_s1, 256  ;;  %p2901_p7 = scmp.lt.s32.totalorder %s3530_s0, %s2899_s1 }
 0x169   : > { %p2896_p3 = pnand %p2894_p13, %p3924_p6  ;;  %p2902_p8 = scmp.lt.s32.totalorder %s2900_s23, %s2893_s18 }
 0x16b   : > { %p2897_p5 = pneg %p2896_p3  ;;  %p2903_p1 = por %p2902_p8, %p2901_p7 }
 0x16d   : > { %p2904_p0 = pnand %p2903_p1, %p2897_p5 }
 0x16f   : > { %2907 = shalt.err (!%p2904_p0)
}
 0x170   : > { %p3925_p9 = scmp.ne.s32.totalorder %s3910_s2, 0  ;;  %s3926_s29 = sld [smem:[#allocation44_spill]] }
 0x171   : > { %s3928_s24 = sld [smem:[#allocation45_spill]] }
 0x172   : > { %2431 = dma.hbm_to_vmem [thread:$0]  (!%p3925_p9), %s3526_s26, 128, %s3530_s0, %s518_s9  }
 0x176   : > { %s3927_s6 = smov %s3926_s29  ;;  %s3560_s21 = scalar_lea.hbm %s3926_s29, %s2143_s4 }
 0x177   : > { %s3567_s1 = scalar_lea.hbm %s3928_s24, %s2143_s4  ;;  %s2908_s23 = scalar_lea.hbm %s3560_s21, 256 }
 0x178   : > { %p2909_p4 = scmp.ne.s32.totalorder %s3560_s21, %s2908_s23  ;;  %s2913_s9 = scalar_lea.hbm %s3927_s6, 512 }
 0x179   : > { %p2914_p10 = scmp.lt.u32.totalorder %s3560_s21, %s3927_s6  ;;  %p2915_p11 = scmp.lt.u32.totalorder %s2913_s9, %s2908_s23 }
 0x17a   : > { %p2911_p12 = pnand %p2909_p4, %p3924_p6  ;;  %p2917_p3 = scmp.lt.u32.totalorder %s2908_s23, %s3560_s21 }
 0x17b   : > { %p2916_p13 = por %p2915_p11, %p2914_p10 }
 0x17c   : > { %p2912_p2 = pneg %p2911_p12 }
 0x17d   : > { %p2918_p5 = por %p2917_p3, %p2916_p13 }
 0x17f   : > { %p2919_p7 = pnand %p2918_p5, %p2912_p2 }
 0x181   : > { %2922 = shalt.err (!%p2919_p7)
}
 0x182   : > { %s2923_s4 = scalar_lea.vmem %s3419_s20, 256  ;;  %s3082_s29 = smov [#allocation7]  }
 0x183   : > { %p2924_p8 = scmp.ne.s32.totalorder %s3419_s20, %s2923_s4  ;;  %s2928_s5 = sshll.u32 %s3082_s29, 4  ;;  %s2929_s5 = int_to_ptr.vmem [resolvable:$false] %s2928_s5 }
 0x184   : > { %s2930_s18 = scalar_lea.vmem %s2929_s5, 512  ;;  %p2931_p4 = scmp.lt.s32.totalorder %s3419_s20, %s2929_s5 }
 0x185   : > { %p2926_p1 = pnand %p2924_p8, %p3924_p6  ;;  %p2932_p12 = scmp.lt.s32.totalorder %s2930_s18, %s2923_s4 }
 0x187   : > { %p2927_p0 = pneg %p2926_p1  ;;  %p2933_p10 = por %p2932_p12, %p2931_p4 }
 0x189   : > { %p2934_p11 = pnand %p2933_p10, %p2927_p0 }
 0x18b   : > { %2937 = shalt.err (!%p2934_p11)
}
 0x18c   : > { %2437 = dma.hbm_to_vmem [thread:$0]  (!%p3925_p9), %s3560_s21, 256, %s3419_s20, %s3387_s7, %s3919_s15, %s3919_s15, %s3918_s11  }
 0x18d   : > { %s3929_s23 = sand.u32 1, %s3066_s16   ;;  %s2938_s0 = scalar_lea.hbm %s3567_s1, 256 }
 0x18e   : > { %s3596_s26 = scalar_lea.sflag [#allocation9], %s3929_s23  ;;  %p2939_p2 = scmp.ne.s32.totalorder %s3567_s1, %s2938_s0 }
 0x18f   : > { %s2943_s17 = scalar_lea.hbm %s3928_s24, 512  ;;  %p2944_p5 = scmp.lt.u32.totalorder %s3567_s1, %s3928_s24 }
 0x190   : > { %p2941_p13 = pnand %p2939_p2, %p3924_p6  ;;  %p2945_p7 = scmp.lt.u32.totalorder %s2943_s17, %s2938_s0 }
 0x191   : > { %p2947_p1 = scmp.lt.u32.totalorder %s2938_s0, %s3567_s1 }
 0x192   : > { %p2942_p3 = pneg %p2941_p13  ;;  %p2946_p8 = por %p2945_p7, %p2944_p5 }
 0x194   : > { %p2948_p0 = por %p2947_p1, %p2946_p8 }
 0x196   : > { %p2949_p4 = pnand %p2948_p0, %p2942_p3 }
 0x198   : > { %2952 = shalt.err (!%p2949_p4)
}
 0x199   : > { %s2953_s7 = scalar_lea.vmem %s3423_s3, 256  ;;  %s3083_s20 = smov [#allocation8]  }
 0x19a   : > { %p2954_p12 = scmp.ne.s32.totalorder %s3423_s3, %s2953_s7  ;;  %s2958_s21 = sshll.u32 %s3083_s20, 4  ;;  %s2959_s21 = int_to_ptr.vmem [resolvable:$false] %s2958_s21 }
 0x19b   : > { %s2960_s5 = scalar_lea.vmem %s2959_s21, 512  ;;  %p2961_p2 = scmp.lt.s32.totalorder %s3423_s3, %s2959_s21 }
 0x19c   : > { %p2956_p10 = pnand %p2954_p12, %p3924_p6  ;;  %p2962_p13 = scmp.lt.s32.totalorder %s2960_s5, %s2953_s7 }
 0x19e   : > { %p2957_p11 = pneg %p2956_p10  ;;  %p2963_p5 = por %p2962_p13, %p2961_p2 }
 0x1a0   : > { %p2964_p7 = pnand %p2963_p5, %p2957_p11 }
 0x1a2   : > { %2967 = shalt.err (!%p2964_p7)
}
 0x1a3   : > { %2440 = dma.hbm_to_vmem [thread:$0]  (!%p3925_p9), %s3567_s1, 256, %s3423_s3, %s3596_s26, %s3919_s15, %s3919_s15, %s3918_s11  }
 0x1a4   : > { %s3930_s27 = sld [smem:[#allocation38_spill]] }
 0x1aa   : > { %p3931_p6 = scmp.ne.s32.totalorder %s3930_s27, 0 }
 0x1ab   : > { %s3626_s18 = sand.u32 (!%p3931_p6), 1, %s3058_s30   ;;  %p3932_p3 = scmp.ne.s32.totalorder (!%p3931_p6), %s3906_s28, 0 }
 0x1ac   : > { %597 = sbr.rel (%p3931_p6) target bundleno = 3705 (0xe79), region = 76  ;;  %s3629_s23 = sshll.u32 (!%p3931_p6), %s3626_s18, 3 }
 0x1ad   : > { %s600_s2 = scalar_lea.sflag (!%p3931_p6), [#allocation3], %s3626_s18  ;;  %s603_s0 = scalar_lea.vmem (!%p3931_p6), [#allocation2], %s3629_s23 }
 0x1b3   : > { %3013 = dma.done.wait (%p3932_p3), %s600_s2, 128  }
 0x1b4   : > { %3015 = vsyncadd (%p3932_p3), %s600_s2, 4294967168  ;;  %s608_s3 = sand.u32 1, %s3190_s19   ;;  %s612_s15 = scalar_lea.vmem [#allocation5], %s3629_s23 }
 0x1b5   : > { %s609_s11 = scalar_lea.sflag [#allocation6], %s608_s3 }
 0x1b6   : > { %3017 = dma.done.wait (%p3932_p3), %s609_s11, 384  }
 0x1b7   : > { %3019 = vsyncadd (%p3932_p3), %s609_s11, 4294966912  ;;  %s2098_s1 = sshll.u32 %s3626_s18, 4  ;;  %s627_s9 = scalar_lea.sflag [#allocation9], %s608_s3 }
 0x1b8   : > { %s3644_s26 = scalar_lea.vmem [#allocation7], %s2098_s1  ;;  %s3646_s14 = scalar_lea.vmem [#allocation8], %s2098_s1 }
 0x1b9   : > { %3021 = dma.done.wait (%p3932_p3), %s627_s9, 256  }
 0x1ba   : > { %3023 = vsyncadd (%p3932_p3), %s627_s9, 4294967040  ;;  %p3933_p9 = scmp.eq.s32.totalorder %s3190_s19, 0 }
 0x1bc   : > { %3025 = dma.done.wait (%p3933_p9), [#allocation9], 512   ;;  %p3934_p8 = pmov %p3933_p9 }
 0x1be   : > { %3027 = vsyncadd (%p3934_p8), [#allocation9], 4294966784  ;;  %p3935_p1 = pmov %p3934_p8 }
 0x1c0   : > { %3029 = dma.done.wait (%p3935_p1), [#allocation12], 1024   ;;  %p3936_p0 = pmov %p3935_p1 }
 0x1c2   : > { %3031 = vsyncadd (%p3936_p0), [#allocation12], 4294966272  ;;  %p3937_p4 = pmov %p3936_p0 }
 0x1c3   : > { %p3938_p12 = pmov %p3936_p0 }
 0x1c4   : > { %3033 = dma.done.wait (%p3937_p4), [#allocation15], 32  }
 0x1c5   : > { %3035 = vsyncadd (%p3938_p12), [#allocation15], 4294967264  ;;  %p3939_p10 = pmov %p3936_p0 }
 0x1c6   : > { %p3940_p11 = pmov %p3936_p0 }
 0x1c7   : > { %3037 = dma.done.wait (%p3939_p10), [#allocation18], 528  }
 0x1c8   : > { %3039 = vsyncadd (%p3940_p11), [#allocation18], 4294966768  ;;  %p3941_p2 = pmov %p3936_p0 }
 0x1c9   : > { %p3942_p13 = pmov %p3936_p0 }
 0x1ca   : > { %3041 = dma.done.wait (%p3941_p2), [#allocation21], 32  }
 0x1cb   : > { %3043 = vsyncadd (%p3942_p13), [#allocation21], 4294967264  ;;  %p3943_p5 = pmov %p3936_p0 }
 0x1cc   : > { %p3944_p7 = pmov %p3936_p0 }
 0x1cd   : > { %3045 = dma.done.wait (%p3943_p5), [#allocation24], 16  }
 0x1ce   : > { %3047 = vsyncadd (%p3944_p7), [#allocation24], 4294967280  ;;  %v3084_v0 = vmov 0.0|0.0   ;;  %vm3085_vm0 = vmmov 0   ;;  %v3086_v1 = vmov 0.0   ;;  %v824_v2 = vld [vmem:[#allocation11] sm:$0xff] }
 0x1cf   : > { %2291 = vmatprep.subr.bf16.mxu0 %v3084_v0  ;;  %2199 = vmatprep.mubr.msk.f32.mxu0 %vm3085_vm0, %v3086_v1  ;;  %v825_v3 = vld [vmem:[#allocation11 + $0x8] sm:$0xff]  ;;  %v826_v4 = vld [vmem:[#allocation11 + $0x10] sm:$0xff]  ;;  %v827_v6 = vld [vmem:[#allocation11 + $0x18] sm:$0xff]  ;;  %vm750_vm1 = vcmask 261120   ;;  %vm1008_vm2 = vcmask 64512   ;;  %s3087_s28 = smov 120  }
 0x1d0   : > { %v2297_v5 = vpack.c.bf16 %v825_v3, %v824_v2  ;;  %v733_v7 = vld [vmem:[%s3644_s26] sm:$0xff]  ;;  %v2301_v9 = vpack.c.bf16 %v827_v6, %v826_v4  ;;  %v740_v12 = vld [vmem:[#allocation10 + $0x8] sm:$0xff]  ;;  %v742_v14 = vld [vmem:[#allocation10 + $0x18] sm:$0xff]  ;;  %vm1089_vm4 = vcmask 130048   ;;  %s3088_s17 = smov 112   ;;  %s3089_s4 = smov 104  }
 0x1d1   : > { %v735_v8 = vld [vmem:[%s3646_s14] sm:$0xff]  ;;  %v734_v15 = vld [vmem:[%s3644_s26 + $0x8] sm:$0xff]  ;;  %vm3700_vm3 = vmpackc.low %vm1008_vm2, %vm1008_vm2  ;;  %s3090_s29 = smov 8   ;;  %s3091_s7 = smov 16   ;;  %vm1709_vm5 = vcmask 195584  }
 0x1d2   : > { %v737_v10 = vadd.f32 %v735_v8, %v733_v7  ;;  %v739_v11 = vld [vmem:[#allocation10] sm:$0xff]  ;;  %2298 = vmatprep.subr.bf16.mxu1 %v2297_v5  ;;  %v741_v13 = vld [vmem:[#allocation10 + $0x10] sm:$0xff]  ;;  %v736_v16 = vld [vmem:[%s3646_s14 + $0x8] sm:$0xff]  ;;  %s3092_s20 = smov 24   ;;  %s2140_s21 = sshll.u32 %s3190_s19, 7 }
 0x1d3   : > { %2300 = vmatpush3.bf16.msra.mxu1 %v2297_v5  ;;  %v2292_v17 = vpack.c.bf16 %v740_v12, %v739_v11  ;;  %v2295_v18 = vpack.c.bf16 %v742_v14, %v741_v13  ;;  %v3686_v19 = vld [vmem:[%s603_s0] sm:$0xff]  ;;  %v731_v20 = vld [vmem:[%s612_s15] sm:$0xff]  ;;  %v738_v21 = vadd.f32 %v736_v16, %v734_v15  ;;  %s729_s5 = scalar_lea.vmem [#allocation25], %s3629_s23  ;;  %s3947_s3 = sld [smem:[#allocation53_spill]] }
 0x1d4   : > { %2210 = vmatprep.mubr.msk.f32.mxu1 %vm750_vm1, %v737_v10  ;;  %2302 = vmatprep.subr.bf16.mxu1 %v2301_v9  ;;  %v732_v22 = vadd.f32 %v731_v20, %v3686_v19  ;;  %v2113_v23 = vld [vmem:[#allocation16] ss:$0 sm:$0xff]  ;;  %v2111_v30 = vld [vmem:[#allocation14] ss:$0 sm:$0xff]  ;;  %v917_v36 = vld [vmem:[#allocation13 + $0x8] sm:$0xff]  ;;  %s1841_s27 = sshll.u32 %s729_s5, 4  ;;  %s3792_s27 = int_to_ptr.vmem [resolvable:$true] %s1841_s27 }
 0x1d5   : > { %2293 = vmatpush3.bf16.msra.mxu0 %v2292_v17  ;;  %v916_v35 = vld [vmem:[#allocation13] sm:$0xff]  ;;  %v918_v37 = vld [vmem:[#allocation13 + $0x10] sm:$0xff]  ;;  %v919_v39 = vld [vmem:[#allocation13 + $0x18] sm:$0xff]  ;;  %s1828_s15 = scalar_lea.sflag [#allocation4], %s3626_s18  ;;  %s2968_s1 = scalar_lea.vmem %s3792_s27, 128 }
 0x1d6   : > { %2294 = vmatprep.subr.bf16.mxu0 %v3084_v0  ;;  %v2305_v38 = vpack.c.bf16 %v917_v36, %v916_v35  ;;  %v2309_v40 = vpack.c.bf16 %v919_v39, %v918_v37  ;;  %v2116_v52 = vld [vmem:[#allocation17] ss:$0 sm:$0xff]  ;;  %p2969_p6 = scmp.ne.s32.totalorder %s3792_s27, %s2968_s1  ;;  %p3948_p3 = scmp.ne.s32.totalorder %s3907_s22, 0 }
 0x1d7   : > { %2304 = vmatpush3.bf16.msra.mxu1 %v2301_v9  ;;  %s3093_s19 = smov [#allocation25]  }
 0x1d8   : > { %2313 = vmatprep.subr.bf16.mxu1 %v3084_v0  ;;  %p2970_p9 = pnand %p2969_p6, %p3948_p3  ;;  %s2972_s23 = sshll.u32 %s3093_s19, 4  ;;  %s2973_s23 = int_to_ptr.vmem [resolvable:$false] %s2972_s23 }
 0x1d9   : > { %2296 = vmatpush3.bf16.msra.mxu0 %v2295_v18  ;;  %s3790_s11 = scalar_lea.hbm %s3947_s3, %s2140_s21  ;;  %s2974_s26 = scalar_lea.vmem %s2973_s23, 256 }
 0x1da   : > { %2211 = vmatmul.mubr.msk.f32.vlgmr.msra.gmra.mrb[0].mxu1 %vm750_vm1, %v738_v21  ;;  %2306 = vmatprep.subr.bf16.mxu0 %v2305_v38  ;;  %p2971_p8 = pneg %p2970_p9  ;;  %p2975_p1 = scmp.lt.s32.totalorder %s3792_s27, %s2973_s23 }
 0x1db   : > { %2228 = vmatprep.mubr.msk.f32.mxu1 %vm3085_vm0, %v3086_v1  ;;  %p2976_p0 = scmp.lt.s32.totalorder %s2974_s26, %s2968_s1 }
 0x1dc   : > { %2200 = vmatmul.mubr.msk.f32.vlgmr.msra.gmra.mrb[0].mxu0 %vm750_vm1, %v732_v22 }
 0x1dd   : > { %2221 = vmatprep.mubr.msk.f32.mxu0 %vm750_vm1, %v733_v7  ;;  %2308 = vmatpush3.bf16.msra.mxu0 %v2305_v38  ;;  %p2977_p4 = por %p2976_p0, %p2975_p1 }
 0x1de   : > { %2310 = vmatprep.subr.bf16.mxu0 %v2309_v40 }
 0x1df   : > { %p2978_p12 = pnand %p2977_p4, %p2971_p8 }
 0x1e1   : > { %2312 = vmatpush3.bf16.msra.mxu0 %v2309_v40 }
 0x1e2   : > { %2324 = vmatprep.subr.bf16.mxu0 %v3084_v0 }
 0x1e4   : > { %2222 = vmatmul.mubr.msk.f32.vlgmr.msra.gmra.mrb[2].mxu0 %vm750_vm1, %v734_v15 }
 0x1e5   : > { %2249 = vmatprep.mubr.msk.f32.mxu0 %vm3085_vm0, %v3086_v1 }
 0x2ad   : > { %v2212_v24 = vpop.f32.mrb[0].mxu1 }
 0x2ae   : > { %v913_v25 = vadd.f32 %v2212_v24, %v2113_v23  ;;  %v907_v26 = vpop.f32.mrb[1].mxu1 }
 0x2af   : > { %v908_v27 = vadd.f32 %v2113_v23, %v907_v26  ;;  %v820_v28 = vpop.f32.mrb[0].mxu0 }
 0x2b0   : > { %v2201_v31 = vpop.f32.mrb[1].mxu0  ;;  %v3710_v34 = vadd.f32 %v2111_v30, %v820_v28 }
 0x2b1   : > { %v2314_v32 = vpack.c.bf16 %v913_v25, %v908_v27  ;;  %v3704_v33 = vpack.i.bf16 %v913_v25, %v908_v27 }
 0x2b3   : > { %2521 = vrot.lane.b32.xlu1 %v3704_v33, %s3087_s28  ;;  %2316 = vmatpush3.bf16.xpose.msk.msra.mxu1 %vm3700_vm3, %v2314_v32 }
 0x2b4   : > { %2317 = vmatprep.subr.bf16.mxu1 %v3084_v0 }
 0x2b7   : > { %1174 = vrot.lane.b32.xlu1 %v3710_v34, %s3087_s28  ;;  %v2223_v45 = vpop.f32.mrb[2].mxu0 }
 0x2b8   : > { %v999_v46 = vpop.f32.mrb[3].mxu0  ;;  %v1005_v53 = vadd.f32 %v2223_v45, %v2116_v52 }
 0x2b9   : > { %v1000_v54 = vadd.f32 %v2116_v52, %v999_v46 }
 0x2ba   : > { %2229 = vmatmul.mubr.msk.f32.vlgmr.msra.gmra.mrb[2].mxu1 %vm1008_vm2, %v3710_v34 }
 0x2bb   : > { %2235 = vmatprep.mubr.msk.f32.mxu1 %vm3085_vm0, %v3086_v1  ;;  %v2318_v55 = vpack.c.bf16 %v1005_v53, %v1000_v54  ;;  %v3725_v56 = vpack.i.bf16 %v1005_v53, %v1000_v54 }
 0x2bd   : > { %2319 = vmatpush3.bf16.msra.mxu1 %v2318_v55 }
 0x2be   : > { %2320 = vmatprep.subr.bf16.mxu1 %v3084_v0 }
 0x325   : > { %v2522_v58 = vpop.permute.xlu1 %2521 }
 0x326   : > { %v2524_v59 = vunpack.i.h.bf16 %v2522_v58  ;;  %v2523_v60 = vunpack.i.l.bf16 %v2522_v58 }
 0x328   : > { %v2321_v63 = vpack.c.bf16 %v2524_v59, %v2523_v60 }
 0x329   : > { %v1175_v2 = vpop.permute.xlu1 %1174 }
 0x38d   : > { %v1084_v41 = vpop.f32.mrb[2].mxu1 }
 0x38e   : > { %v1088_v42 = vmul.f32 0.35355338, %v1084_v41  ;;  %v2230_v43 = vpop.f32.mrb[3].mxu1 }
 0x390   : > { %v1090_v44 = vsel %vm1089_vm4, %v1088_v42, -inf }
 0x391   : > { %1091 = vmax.xlane.f32.xlu0 %v1090_v44 }
 0x41e   : > { %v1092_v47 = vpop.xlane.xlu0 %1091 }
 0x41f   : > { %v1093_v48 = vsub.f32 %v1088_v42, %v1092_v47 }
 0x421   : > { %v1094_v49 = vmul.f32 1.442695, %v1093_v48 }
 0x423   : > { %2550 = vpow2.f32 %v1094_v49 }
 0x42d   : > { %v2551_v50 = vpop.eup %2550 }
 0x42e   : > { %v1096_v51 = vsel %vm1089_vm4, %v2551_v50, 0.0 }
 0x42f   : > { %1097 = vadd.xlane.f32.xlu0 %v1096_v51 }
 0x4bc   : > { %v1098_v57 = vpop.xlane.xlu0 %1097 }
 0x4bd   : > { %2552 = vrcp.f32 %v1098_v57 }
 0x4c7   : > { %v2553_v61 = vpop.eup %2552 }
 0x4c8   : > { %v1100_v62 = vmul.f32 %v2553_v61, %v2551_v50 }
 0x4ca   : > { %2236 = vmatmul.mubr.msk.f32.vlgmr.msra.gmra.mrb[4].mxu1 %vm1089_vm4, %v1100_v62 }
 0x4cb   : > { %2323 = vmatpush3.bf16.xpose.msk.msra.mxu1 %vm3700_vm3, %v2321_v63  ;;  %2242 = vmatprep.mubr.msk.f32.mxu1 %vm3085_vm0, %v3086_v1 }
 0x4cc   : > { %2331 = vmatprep.subr.bf16.mxu1 %v3084_v0 }
 0x4d2   : > { %2243 = vmatmul.mubr.msk.f32.vlgmr.msra.gmra.mrb[6].mxu1 %vm1008_vm2, %v1175_v2 }
 0x4d3   : > { %2263 = vmatprep.mubr.msk.f32.mxu1 %vm3085_vm0, %v3086_v1 }
 0x59d   : > { %v3737_v3 = vpop.f32.mrb[4].mxu1 }
 0x59e   : > { %v2237_v4 = vpop.f32.mrb[5].mxu1 }
 0x5a5   : > { %v1252_v5 = vpop.f32.mrb[6].mxu1 }
 0x5a6   : > { %v1256_v6 = vmul.f32 0.35355338, %v1252_v5  ;;  %v2244_v7 = vpop.f32.mrb[7].mxu1 }
 0x5a7   : > { %v1711_v7 = vld [vmem:[#allocation19] sm:$0xff] }
 0x5a8   : > { %v1257_v8 = vsel %vm1089_vm4, %v1256_v6, -inf }
 0x5a9   : > { %1258 = vmax.xlane.f32.xlu0 %v1257_v8  ;;  %v1712_v8 = vld [vmem:[#allocation19 + $0x8] sm:$0xff] }
 0x5bf   : > { %2526 = vrot.lane.b32.xlu0 %v3725_v56, %s3087_s28 }
 0x5c3   : > { %2531 = vrot.lane.b32.xlu0 %v3704_v33, %s3088_s17 }
 0x5c7   : > { %1349 = vrot.lane.b32.xlu0 %v3710_v34, %s3088_s17 }
 0x636   : > { %v1259_v9 = vpop.xlane.xlu0 %1258 }
 0x637   : > { %v1260_v10 = vsub.f32 %v1256_v6, %v1259_v9  ;;  %v1713_v9 = vld [vmem:[#allocation19 + $0x10] sm:$0xff] }
 0x639   : > { %v1261_v11 = vmul.f32 1.442695, %v1260_v10  ;;  %v2342_v10 = vpack.c.bf16 %v1712_v8, %v1711_v7 }
 0x63a   : > { %v2527_v12 = vpop.permute.xlu0 %2526 }
 0x63b   : > { %2554 = vpow2.f32 %v1261_v11  ;;  %v2529_v13 = vunpack.i.h.bf16 %v2527_v12  ;;  %v2528_v14 = vunpack.i.l.bf16 %v2527_v12  ;;  %v1714_v11 = vld [vmem:[#allocation19 + $0x18] sm:$0xff] }
 0x63c   : > { %v2345_v12 = vpack.c.bf16 %v1714_v11, %v1713_v9 }
 0x63d   : > { %v2325_v15 = vpack.c.bf16 %v2529_v13, %v2528_v14 }
 0x63e   : > { %v2532_v23 = vpop.permute.xlu0 %2531 }
 0x63f   : > { %2326 = vmatpush3.bf16.msra.mxu0 %v2325_v15  ;;  %v2534_v25 = vunpack.i.h.bf16 %v2532_v23  ;;  %v2533_v26 = vunpack.i.l.bf16 %v2532_v23 }
 0x640   : > { %2327 = vmatprep.subr.bf16.mxu0 %v3084_v0 }
 0x641   : > { %v2328_v30 = vpack.c.bf16 %v2534_v25, %v2533_v26 }
 0x642   : > { %v1350_v31 = vpop.permute.xlu0 %1349 }
 0x645   : > { %v2555_v16 = vpop.eup %2554 }
 0x646   : > { %v1263_v17 = vsel %vm1089_vm4, %v2555_v16, 0.0 }
 0x647   : > { %1264 = vadd.xlane.f32.xlu1 %v1263_v17 }
 0x658   : > { %2536 = vrot.lane.b32.xlu1 %v3725_v56, %s3088_s17 }
 0x65c   : > { %2541 = vrot.lane.b32.xlu1 %v3704_v33, %s3089_s4 }
 0x6d4   : > { %v1265_v18 = vpop.xlane.xlu1 %1264 }
 0x6d5   : > { %2556 = vrcp.f32 %v1265_v18 }
 0x6d8   : > { %v2537_v20 = vpop.permute.xlu1 %2536 }
 0x6d9   : > { %v2539_v21 = vunpack.i.h.bf16 %v2537_v20  ;;  %v2538_v22 = vunpack.i.l.bf16 %v2537_v20 }
 0x6db   : > { %v2332_v24 = vpack.c.bf16 %v2539_v21, %v2538_v22  ;;  %v2135_v21 = vld [vmem:[#allocation20] ss:$0 sm:$0xff] }
 0x6dc   : > { %v2542_v44 = vpop.permute.xlu1 %2541 }
 0x6dd   : > { %2333 = vmatpush3.bf16.msra.mxu1 %v2332_v24  ;;  %v2544_v46 = vunpack.i.h.bf16 %v2542_v44  ;;  %v2543_v47 = vunpack.i.l.bf16 %v2542_v44 }
 0x6de   : > { %2334 = vmatprep.subr.bf16.mxu1 %v3084_v0 }
 0x6df   : > { %v2557_v27 = vpop.eup %2556  ;;  %v2335_v50 = vpack.c.bf16 %v2544_v46, %v2543_v47 }
 0x6e0   : > { %v1267_v28 = vmul.f32 %v2557_v27, %v2555_v16 }
 0x6e2   : > { %2250 = vmatmul.mubr.msk.f32.vlgmr.msra.gmra.mrb[4].mxu0 %vm1089_vm4, %v1267_v28 }
 0x6e3   : > { %2330 = vmatpush3.bf16.xpose.msk.msra.mxu0 %vm3700_vm3, %v2328_v30  ;;  %2256 = vmatprep.mubr.msk.f32.mxu0 %vm3085_vm0, %v3086_v1 }
 0x6e4   : > { %2338 = vmatprep.subr.bf16.mxu0 %v3084_v0 }
 0x6ea   : > { %2257 = vmatmul.mubr.msk.f32.vlgmr.msra.gmra.mrb[6].mxu0 %vm1008_vm2, %v1350_v31 }
 0x6eb   : > { %2277 = vmatprep.mubr.msk.f32.mxu0 %vm3085_vm0, %v3086_v1 }
 0x7b5   : > { %v1345_v32 = vpop.f32.mrb[4].mxu0 }
 0x7b6   : > { %v2251_v33 = vpop.f32.mrb[5].mxu0 }
 0x7bd   : > { %v1427_v35 = vpop.f32.mrb[6].mxu0 }
 0x7be   : > { %v1431_v36 = vmul.f32 0.35355338, %v1427_v35  ;;  %v2258_v37 = vpop.f32.mrb[7].mxu0 }
 0x7bf   : > { %v2138_v37 = vld [vmem:[#allocation23] ss:$0 sm:$0xff] }
 0x7c0   : > { %v1432_v38 = vsel %vm1089_vm4, %v1431_v36, -inf }
 0x7c1   : > { %1433 = vmax.xlane.f32.xlu0 %v1432_v38 }
 0x84e   : > { %v1434_v39 = vpop.xlane.xlu0 %1433 }
 0x84f   : > { %v1435_v40 = vsub.f32 %v1431_v36, %v1434_v39 }
 0x851   : > { %v1436_v41 = vmul.f32 1.442695, %v1435_v40 }
 0x853   : > { %2558 = vpow2.f32 %v1436_v41 }
 0x85d   : > { %v2559_v42 = vpop.eup %2558 }
 0x85e   : > { %v1438_v43 = vsel %vm1089_vm4, %v2559_v42, 0.0 }
 0x85f   : > { %1439 = vadd.xlane.f32.xlu1 %v1438_v43 }
 0x870   : > { %1522 = vrot.lane.b32.xlu1 %v3710_v34, %s3089_s4 }
 0x8ec   : > { %v1440_v45 = vpop.xlane.xlu1 %1439 }
 0x8ed   : > { %2560 = vrcp.f32 %v1440_v45 }
 0x8f0   : > { %v1523_v51 = vpop.permute.xlu1 %1522 }
 0x8f7   : > { %v2561_v48 = vpop.eup %2560 }
 0x8f8   : > { %v1442_v49 = vmul.f32 %v2561_v48, %v2559_v42 }
 0x8fa   : > { %2264 = vmatmul.mubr.msk.f32.vlgmr.msra.gmra.mrb[8].mxu1 %vm1089_vm4, %v1442_v49 }
 0x8fb   : > { %2337 = vmatpush3.bf16.xpose.msk.msra.mxu1 %vm3700_vm3, %v2335_v50  ;;  %2270 = vmatprep.mubr.msk.f32.mxu1 %vm3085_vm0, %v3086_v1 }
 0x902   : > { %2271 = vmatmul.mubr.msk.f32.vlgmr.msra.gmra.mrb[10].mxu1 %vm1008_vm2, %v1523_v51 }
 0x9cd   : > { %v1518_v34 = vpop.f32.mrb[8].mxu1 }
 0x9ce   : > { %v2265_v52 = vpop.f32.mrb[9].mxu1 }
 0x9d5   : > { %v1600_v53 = vpop.f32.mrb[10].mxu1 }
 0x9d6   : > { %v1604_v54 = vmul.f32 0.35355338, %v1600_v53  ;;  %v2272_v55 = vpop.f32.mrb[11].mxu1 }
 0x9d8   : > { %v1605_v57 = vsel %vm1089_vm4, %v1604_v54, -inf }
 0x9d9   : > { %1606 = vmax.xlane.f32.xlu0 %v1605_v57 }
 0x9ef   : > { %2546 = vrot.lane.b32.xlu0 %v3725_v56, %s3089_s4 }
 0x9f3   : > { %1696 = vrot.lane.b32.xlu0 %v1345_v32, %s3090_s29 }
 0x9f7   : > { %1700 = vrot.lane.b32.xlu0 %v1518_v34, %s3091_s7 }
 0xa66   : > { %v1607_v29 = vpop.xlane.xlu0 %1606 }
 0xa67   : > { %v1608_v58 = vsub.f32 %v1604_v54, %v1607_v29 }
 0xa69   : > { %v1609_v59 = vmul.f32 1.442695, %v1608_v58 }
 0xa6a   : > { %v2547_v60 = vpop.permute.xlu0 %2546 }
 0xa6b   : > { %2562 = vpow2.f32 %v1609_v59  ;;  %v2549_v61 = vunpack.i.h.bf16 %v2547_v60  ;;  %v2548_v62 = vunpack.i.l.bf16 %v2547_v60 }
 0xa6d   : > { %v2339_v63 = vpack.c.bf16 %v2549_v61, %v2548_v62 }
 0xa6e   : > { %v1697_v15 = vpop.permute.xlu0 %1696 }
 0xa6f   : > { %2340 = vmatpush3.bf16.msra.mxu0 %v2339_v63 }
 0xa70   : > { %2341 = vmatprep.subr.bf16.mxu0 %v3084_v0 }
 0xa72   : > { %v1701_v16 = vpop.permute.xlu0 %1700 }
 0xa75   : > { %v2563_v2 = vpop.eup %2562 }
 0xa76   : > { %v1611_v4 = vsel %vm1089_vm4, %v2563_v2, 0.0 }
 0xa77   : > { %1612 = vadd.xlane.f32.xlu1 %v1611_v4 }
 0xb04   : > { %v1613_v56 = vpop.xlane.xlu1 %1612 }
 0xb05   : > { %2564 = vrcp.f32 %v1613_v56 }
 0xb0f   : > { %v2565_v5 = vpop.eup %2564 }
 0xb10   : > { %v1615_v6 = vmul.f32 %v2565_v5, %v2563_v2 }
 0xb12   : > { %2278 = vmatmul.mubr.msk.f32.vlgmr.msra.gmra.mrb[8].mxu0 %vm1089_vm4, %v1615_v6 }
 0xb13   : > { %2288 = vmatprep.mubr.msk.f32.mxu0 %vm3085_vm0, %v3086_v1  ;;  %2343 = vmatpush3.bf16.msra.mxu0 %v2342_v10  ;;  %v1707_v1 = vsel %vm1008_vm2, %v3737_v3, %v1697_v15 }
 0xb14   : > { %2344 = vmatprep.subr.bf16.mxu0 %v3084_v0  ;;  %v1708_v17 = vsel %vm1089_vm4, %v1707_v1, %v1701_v16 }
 0xb17   : > { %2346 = vmatpush3.bf16.msra.mxu0 %v2345_v12 }
 0xbe5   : > { %v1691_v13 = vpop.f32.mrb[8].mxu0 }
 0xbe6   : > { %1704 = vrot.lane.b32.xlu0 %v1691_v13, %s3092_s20  ;;  %v2279_v14 = vpop.f32.mrb[9].mxu0 }
 0xc58   : > { %v1705_v18 = vpop.permute.xlu0 %1704 }
 0xc59   : > { %v1710_v20 = vsel %vm1709_vm5, %v1708_v17, %v1705_v18 }
 0xc5a   : > { %2289 = vmatmul.mubr.msk.f32.vlgmr.msra.gmra.mrb[10].mxu0 %vm750_vm1, %v1710_v20 }
 0xd2d   : > { %v1791_v22 = vpop.f32.mrb[10].mxu0 }
 0xd2e   : > { %v1792_v0 = vadd.f32 %v2135_v21, %v1791_v22  ;;  %v2290_v23 = vpop.f32.mrb[11].mxu0 }
 0xd30   : > { %v1795_v24 = vadd.f32 %v1792_v0, %v3686_v19  ;;  %v2137_v19 = vld [vmem:[#allocation22] ss:$0 sm:$0xff] }
 0xd32   : > { %v1796_v25 = vsel %vm750_vm1, %v1795_v24, 0.0 }
 0xd33   : > { %1797 = vadd.xlane.f32.xlu1 %v1796_v25 }
 0xdc0   : > { %v1798_v26 = vpop.xlane.xlu1 %1797 }
 0xdc1   : > { %v1800_v27 = vmul.f32 0.03125, %v1798_v26 }
 0xdc3   : > { %v1801_v3 = vsub.f32 %v1795_v24, %v1800_v27 }
 0xdc5   : > { %v1802_v28 = vmul.f32 %v1801_v3, %v1801_v3 }
 0xdc7   : > { %v1803_v30 = vsel %vm750_vm1, %v1802_v28, 0.0 }
 0xdc8   : > { %1804 = vadd.xlane.f32.xlu0 %v1803_v30 }
 0xe55   : > { %v1805_v31 = vpop.xlane.xlu0 %1804 }
 0xe56   : > { %v1806_v32 = vmul.f32 0.03125, %v1805_v31 }
 0xe58   : > { %v1807_v33 = vadd.f32 1e-05, %v1806_v32 }
 0xe5a   : > { %2566 = vrsqrt.f32 %v1807_v33 }
 0xe64   : > { %v2567_v35 = vpop.eup %2566 }
 0xe65   : > { %v1809_v36 = vmul.f32 %v2567_v35, %v1801_v3 }
 0xe67   : > { %v1817_v38 = vmul.f32 %v2137_v19, %v1809_v36 }
 0xe69   : > { %v1825_v39 = vadd.f32 %v2138_v37, %v1817_v38 }
 0xe6b   : > { %1826 = vst.msk [vmem:[%s729_s5] sm:$0xff] %vm750_vm1, %v1825_v39 }
 0xe6c   : > { %2981 = shalt.err (!%p2978_p12)
}
 0xe6d   : > { %s2982_s18 = scalar_lea.hbm %s3790_s11, 128  ;;  %s2986_s28 = scalar_lea.hbm %s3947_s3, 256 }
 0xe6e   : > { %p2983_p10 = scmp.ne.s32.totalorder %s3790_s11, %s2982_s18  ;;  %p2987_p13 = scmp.lt.u32.totalorder %s3790_s11, %s3947_s3 }
 0xe6f   : > { %p2988_p5 = scmp.lt.u32.totalorder %s2986_s28, %s2982_s18  ;;  %p2990_p6 = scmp.lt.u32.totalorder %s2982_s18, %s3790_s11 }
 0xe70   : > { %p2984_p11 = pnand %p2983_p10, %p3948_p3 }
 0xe71   : > { %p2989_p7 = por %p2988_p5, %p2987_p13 }
 0xe72   : > { %p2985_p2 = pneg %p2984_p11 }
 0xe73   : > { %p2991_p9 = por %p2990_p6, %p2989_p7 }
 0xe75   : > { %p2992_p8 = pnand %p2991_p9, %p2985_p2 }
 0xe77   : > { %2995 = shalt.err (!%p2992_p8)
}
 0xe78   : > { %2395 = dma.vmem_to_hbm [thread:$0]  (%p3948_p3), %s3792_s27, 128, %s3790_s11, %s1828_s15  }
 0xe79 PF: > { %s3949_s29 = sld [smem:[#allocation36_spill]]  ;;  %s3950_s7 = sld [smem:[#allocation41_spill]] }
 0xe7a   : > { %p3952_p0 = scmp.ge.s32.totalorder %s3066_s16, 2 }
 0xe7f   : > { %s1853_s20 = sand.u32 1, %s3949_s29   ;;  %p3951_p1 = scmp.ne.s32.totalorder %s3950_s7, 0 }
 0xe80   : > { %s1854_s21 = scalar_lea.sflag [#allocation4], %s1853_s20 }
 0xe81   : > { %p2442_p4 = pnand %p3952_p0, %p3951_p1 }
 0xe83   : > { %3049 = dma.done.wait (!%p2442_p4), %s1854_s21, 128  }
 0xe84   : > { %3051 = vsyncadd (!%p2442_p4), %s1854_s21, 4294967168  ;;  %s3953_s16 = sld [smem:[#allocation39_spill]]  ;;  %s3954_s5 = sld [smem:[#allocation37_spill]] }
 0xe85   : > { %s3955_s15 = sld [smem:[#allocation40_spill]]  ;;  %s3956_s29 = smov %s3058_s30 }
 0xe8a   : > { %p38_p12 = scmp.ge.s32.totalorder %s3953_s16, 4   ;;  %s3957_s30 = smov %s3954_s5 }
 0xe8c   :  { %40 = sbr.rel (!%p38_p12) target bundleno = 27 (0x1b), region = 198 }
 0xe93   :  { %1859 = vsyncpa [#allocation3], 1 }
 0xe94   :  { %1861 = vsyncpa [#allocation3 + $0x1], 1 }
 0xe95   :  { %1862 = vsyncpa [#allocation6], 1 }
 0xe96   :  { %1864 = vsyncpa [#allocation6 + $0x1], 1 }
 0xe97   :  { %1865 = vsyncpa [#allocation9], 1 }
 0xe98   :  { %1867 = vsyncpa [#allocation9 + $0x1], 1 }
 0xe99   :  { %1868 = vsyncpa [#allocation12], 1 }
 0xe9a   :  { %1869 = vsyncpa [#allocation15], 1 }
 0xe9b   :  { %1870 = vsyncpa [#allocation18], 1 }
 0xe9c   :  { %1871 = vsyncpa [#allocation21], 1 }
 0xe9d   :  { %1872 = vsyncpa [#allocation24], 1 }
 0xe9e   :  { %1873 = vsyncpa [#allocation4], 1 }
 0xe9f   :  { %1875 = vsyncpa [#allocation4 + $0x1], 1 }

</bundles_post_ra>
